<compile_context>
chip_gen: v5e
topology: v5e:2x2
jax: 0.10.0
libtpu: 0.0.40
codegen_flags: <defaults>
</compile_context>

<pallas_src>
import functools
import math

import jax
import jax.numpy as jnp
from jax.experimental import pallas as pl
from jax.experimental.pallas import tpu as pltpu

SCALE = math.sqrt(0.5)
MXU_DTYPE = jnp.bfloat16   # matmul-operand dtype (f32 accumulate / elementwise)
NEG_INF = -1e30            # finite "masked" energy (avoids inf-inf corners)
APPROX_SOFTMAX = True      # EUP approx reciprocal (~1e-3 row-sum error)


def _round_up(x, m):
    return ((x + m - 1) // m) * m


# --------------------------------------------------------------------------
# Fused kernel: full encoder + decoder for a block of Bblk batch elements
# --------------------------------------------------------------------------
def _seq2seq_kernel(
    # ---- inputs ----
    x_ref, y_ref,
    enc_in_w, enc_in_b, enc_pos,
    enc_e2h_w, enc_e2h_b, enc_h2e_w, enc_h2e_b,
    enc_cw, enc_cb,
    dec_in_w, dec_in_b, dec_pos,
    dec_e2h_w, dec_e2h_b, dec_h2e_w, dec_h2e_b,
    dec_cw, dec_cb, dec_ah2e_w, dec_ah2e_b, dec_ae2h_w, dec_ae2h_b,
    fc_w, fc_b,
    # ---- outputs ----
    out_ref, attn_ref,
    # ---- scratch ----
    xpad_ref, keys_ref,
    *, ksize, n_enc, n_dec, pad_rows,
):
    f32 = jnp.float32
    bblk, ss, _ = x_ref.shape
    _, st, _ = y_ref.shape
    hid = enc_e2h_w.shape[1]
    emb = enc_in_w.shape[1]
    ss_pad = attn_ref.shape[2]
    enc_pad = (ksize - 1) // 2                       # 'same' padding (odd k)

    def mxu(a, b):
        # bf16 MXU operands (weights are pre-cast in the wrapper), f32 acc.
        return jnp.dot(a.astype(MXU_DTYPE), b, preferred_element_type=f32)

    # ---- conv-padding scratch maintenance (every grid step) --------------
    # Zero only the pad rows the taps read.  This runs every step because
    # (a) scratch is uninitialized when a core starts its slice of a
    # "parallel" grid (program_id==0 may never execute on core 1), and
    # (b) when st > ss the previous step's decoder interior store overwrites
    # the encoder's right-pad region.
    if ksize > 1:
        xpad_ref[:, pad_rows - (ksize - 1):pad_rows, :] = jnp.zeros(
            (bblk, ksize - 1, hid), f32)
    if enc_pad > 0:
        xpad_ref[:, pad_rows + ss:pad_rows + ss + enc_pad, :] = jnp.zeros(
            (bblk, enc_pad, hid), f32)

    def conv_glu(h, cw_ref, cb_ref, layer, pad_left, seq):
        """Conv1d + GLU, batched over the whole batch block.

        `h` is (bblk*seq, hid).  It is staged once at an aligned offset of the
        pre-zeroed padding scratch; each of the ksize tap matmuls then reads a
        shifted window and runs with M = bblk*seq rows."""
        xpad_ref[:, pad_rows:pad_rows + seq, :] = h.reshape(bblk, seq, hid)
        acc = None
        for k in range(ksize):                               # static unroll
            s0 = pad_rows - pad_left + k
            tap = xpad_ref[:, s0:s0 + seq, :].reshape(bblk * seq, hid)
            t = mxu(tap, cw_ref[layer, k * hid:(k + 1) * hid, :])
            acc = t if acc is None else acc + t
        acc = acc + cb_ref[layer]
        return acc[:, :hid] * jax.nn.sigmoid(acc[:, hid:])   # GLU, f32

    # ------------------------------ encoder ------------------------------
    x2 = x_ref[...].reshape(bblk * ss, x_ref.shape[2])
    e_tok = mxu(x2, enc_in_w[...]) + enc_in_b[...]
    e_emb3 = e_tok.reshape(bblk, ss, emb) + enc_pos[...]      # + positional
    e_emb = e_emb3.reshape(bblk * ss, emb)
    conv_in = mxu(e_emb, enc_e2h_w[...]) + enc_e2h_b[...]     # (bblk*ss, hid)

    for l in range(n_enc):
        glu = conv_glu(conv_in, enc_cw, enc_cb, l, enc_pad, ss)
        conv_in = (glu + conv_in) * SCALE                     # residual

    enc_conved = mxu(conv_in, enc_h2e_w[...]) + enc_h2e_b[...]   # (bblk*ss, emb)
    enc_combined = (enc_conved + e_emb) * SCALE

    # Hoisted decoder-loop-invariant attention operands: keys staged once as a
    # lane-padded bf16 buffer (padded rows zeroed) so every layer's energy tile
    # and the attention output store are lane-dense; values cast to bf16 once.
    if ss_pad > ss:
        keys_ref[:, ss:, :] = jnp.zeros((bblk, ss_pad - ss, emb), MXU_DTYPE)
    keys_ref[:, :ss, :] = enc_conved.reshape(bblk, ss, emb).astype(MXU_DTYPE)
    keys = keys_ref[...]                                      # (bblk, ss_pad, emb)
    vals = enc_combined.reshape(bblk, ss, emb).astype(MXU_DTYPE)

    # ------------------------------ decoder ------------------------------
    y2 = y_ref[...].reshape(bblk * st, y_ref.shape[2])
    d_tok = mxu(y2, dec_in_w[...]) + dec_in_b[...]
    d_emb3 = d_tok.reshape(bblk, st, emb) + dec_pos[...]
    conv_in = mxu(d_emb3.reshape(bblk * st, emb), dec_e2h_w[...]) + dec_e2h_b[...]

    key_valid = jax.lax.broadcasted_iota(jnp.int32, (bblk, st, ss_pad), 2) < ss

    attn = None
    for l in range(n_dec):
        # causal conv + GLU (no zero-residual DMA)
        glu = conv_glu(conv_in, dec_cw, dec_cb, l, ksize - 1, st)

        # attention over the VMEM-resident encoder outputs
        conved_emb = mxu(glu, dec_ah2e_w[l]) + dec_ah2e_b[l]
        combined = (conved_emb.reshape(bblk, st, emb) + d_emb3) * SCALE
        energy = jnp.einsum('bqd,bkd->bqk', combined.astype(MXU_DTYPE), keys,
                            preferred_element_type=f32)       # (bblk, st, ss_pad)
        energy = jnp.where(key_valid, energy, NEG_INF)
        m = jnp.max(energy, axis=-1, keepdims=True)
        e = jnp.exp(energy - m)
        denom = jnp.sum(e, axis=-1, keepdims=True)
        if APPROX_SOFTMAX:
            p = e * pl.reciprocal(denom, approx=True)         # EUP slot
        else:
            p = e / denom
        attended = jnp.einsum('bqk,bkd->bqd',
                              p[:, :, :ss].astype(MXU_DTYPE), vals,
                              preferred_element_type=f32)     # (bblk, st, emb)
        attended_hid = (mxu(attended.reshape(bblk * st, emb), dec_ae2h_w[l])
                        + dec_ae2h_b[l])

        conved = (glu + attended_hid) * SCALE
        conv_in = (conved + conv_in) * SCALE                  # residual
        attn = p

    # fused output head: hid->emb then fc_out (lane-dense, padded to out_pad)
    dec_emb = mxu(conv_in, dec_h2e_w[...]) + dec_h2e_b[...]
    logits = mxu(dec_emb, fc_w[...]) + fc_b[...]
    out_ref[...] = logits.reshape(bblk, st, -1).astype(out_ref.dtype)
    attn_ref[...] = attn.astype(attn_ref.dtype)


# --------------------------------------------------------------------------
# Parameters
# --------------------------------------------------------------------------
def init_params(key, src_feat, trg_feat, emb, hid, out_dim, ksize,
                n_enc_layers, n_dec_layers, max_len):
    keys = iter(jax.random.split(key, 128))

    def w(shape, s=0.1):
        return jax.random.normal(next(keys), shape, jnp.float32) * s

    return {
        "enc_in_w": w((src_feat, emb)), "enc_in_b": w((emb,)),
        "enc_pos": w((max_len, emb)),
        "enc_emb2hid_w": w((emb, hid)), "enc_emb2hid_b": w((hid,)),
        "enc_hid2emb_w": w((hid, emb)), "enc_hid2emb_b": w((emb,)),
        "enc_convs": [
            {"w": w((ksize, hid, 2 * hid)), "b": w((2 * hid,))}
            for _ in range(n_enc_layers)
        ],
        "dec_in_w": w((trg_feat, emb)), "dec_in_b": w((emb,)),
        "dec_pos": w((max_len, emb)),
        "dec_emb2hid_w": w((emb, hid)), "dec_emb2hid_b": w((hid,)),
        "dec_hid2emb_w": w((hid, emb)), "dec_hid2emb_b": w((emb,)),
        "dec_convs": [
            {
                "w": w((ksize, hid, 2 * hid)), "b": w((2 * hid,)),
                "a_h2e_w": w((hid, emb)), "a_h2e_b": w((emb,)),
                "a_e2h_w": w((emb, hid)), "a_e2h_b": w((hid,)),
            }
            for _ in range(n_dec_layers)
        ],
        "fc_out_w": w((emb, out_dim)), "fc_out_b": w((out_dim,)),
    }


def _prepare_params(p, ksize, ss, st, out_pad):
    """Pack parameters for the fused kernel: bf16 matmul weights, f32 (1, N)
    biases, per-layer tensors stacked, conv weights flattened to
    (ksize*hid, 2*hid), fc head zero-padded to a lane-dense out_pad."""
    f32 = jnp.float32
    hid = p["enc_emb2hid_w"].shape[1]
    emb, out_dim = p["fc_out_w"].shape

    def w(a):
        return a.astype(MXU_DTYPE)

    def b(a):
        return a.reshape(1, -1).astype(f32)

    def conv_w(layers):
        return jnp.stack(
            [l["w"].reshape(ksize * hid, 2 * hid) for l in layers]
        ).astype(MXU_DTYPE)

    def conv_b(layers):
        return jnp.stack([l["b"].reshape(1, 2 * hid) for l in layers]).astype(f32)

    fc_w = jnp.zeros((emb, out_pad), f32).at[:, :out_dim].set(p["fc_out_w"])
    fc_b = jnp.zeros((1, out_pad), f32).at[:, :out_dim].set(
        p["fc_out_b"].reshape(1, -1))

    return (
        w(p["enc_in_w"]), b(p["enc_in_b"]), p["enc_pos"][:ss].astype(f32),
        w(p["enc_emb2hid_w"]), b(p["enc_emb2hid_b"]),
        w(p["enc_hid2emb_w"]), b(p["enc_hid2emb_b"]),
        conv_w(p["enc_convs"]), conv_b(p["enc_convs"]),
        w(p["dec_in_w"]), b(p["dec_in_b"]), p["dec_pos"][:st].astype(f32),
        w(p["dec_emb2hid_w"]), b(p["dec_emb2hid_b"]),
        w(p["dec_hid2emb_w"]), b(p["dec_hid2emb_b"]),
        conv_w(p["dec_convs"]), conv_b(p["dec_convs"]),
        jnp.stack([l["a_h2e_w"] for l in p["dec_convs"]]).astype(MXU_DTYPE),
        jnp.stack([l["a_h2e_b"].reshape(1, -1) for l in p["dec_convs"]]).astype(f32),
        jnp.stack([l["a_e2h_w"] for l in p["dec_convs"]]).astype(MXU_DTYPE),
        jnp.stack([l["a_e2h_b"].reshape(1, -1) for l in p["dec_convs"]]).astype(f32),
        w(fc_w), fc_b.astype(f32),
    )


# --------------------------------------------------------------------------
# Forward (single pallas_call)
# --------------------------------------------------------------------------
def _const_index_map(ndim):
    def imap(i):
        return (0,) * ndim
    return imap


def _pick_batch_block(bsz, seq_rows, target_rows=256):
    """Largest divisor of bsz whose block keeps M = Bblk*seq <= target_rows."""
    best = 1
    for d in range(1, bsz + 1):
        if bsz % d == 0 and d * seq_rows <= target_rows:
            best = d
    return best


def _vmem_limit_bytes():
    """Generation-aware scoped-VMEM limit: ~3/4 of physical (≈48 MiB on v7x's
    64 MiB/TC, ≈96 MiB on v5e/v6e's 128 MiB), never below the 32 MiB default."""
    try:
        cap = int(pltpu.get_tpu_info().vmem_capacity_bytes)
    except Exception:
        cap = 128 * 1024 * 1024
    return max(32 * 1024 * 1024, min(100 * 1024 * 1024, (cap * 3) // 4))


def seq2seq_forward(params, x, y, ksize):
    assert ksize % 2 == 1, "encoder 'same' conv requires an odd kernel size"
    bsz, ss, _ = x.shape
    _, st, _ = y.shape
    hid = params["enc_emb2hid_w"].shape[1]
    emb = params["enc_in_w"].shape[1]
    out_dim = params["fc_out_w"].shape[1]
    n_enc = len(params["enc_convs"])
    n_dec = len(params["dec_convs"])
    assert n_dec >= 1

    out_pad = _round_up(out_dim, 128)                 # lane-dense logits store
    ss_pad = _round_up(ss, 128)                       # lane-dense attention store
    bblk = _pick_batch_block(bsz, max(ss, st))        # fold batch into matmul M

    flat = _prepare_params(params, ksize, ss, st, out_pad)

    # Conv-padding scratch: the interior starts at a sublane-aligned offset so
    # the interior store stays unmasked; pad rows are kept zero by the kernel.
    pad_rows = _round_up(max(8, ksize - 1), 8)
    scratch_rows = pad_rows + max(ss, st) + ksize

    # Grid-invariant weights: full-array blocks with constant index maps (the
    # window never moves, so it is not re-fetched between grid steps).
    # TODO(synk): single-buffer these (pipeline_mode=pl.Buffered(1)) and
    # N-tile a vocab-sized fc_out head to stay inside v7x's 64 MiB/TC VMEM.
    in_specs = [
        pl.BlockSpec((bblk, ss, x.shape[-1]), lambda i: (i, 0, 0)),
        pl.BlockSpec((bblk, st, y.shape[-1]), lambda i: (i, 0, 0)),
    ] + [pl.BlockSpec(a.shape, _const_index_map(a.ndim)) for a in flat]

    kernel = functools.partial(
        _seq2seq_kernel, ksize=ksize, n_enc=n_enc, n_dec=n_dec,
        pad_rows=pad_rows)

    out_p, attn_p = pl.pallas_call(
        kernel,
        grid=(bsz // bblk,),
        in_specs=in_specs,
        out_specs=(
            pl.BlockSpec((bblk, st, out_pad), lambda i: (i, 0, 0)),
            pl.BlockSpec((bblk, st, ss_pad), lambda i: (i, 0, 0)),
        ),
        out_shape=(
            jax.ShapeDtypeStruct((bsz, st, out_pad), jnp.float32),
            jax.ShapeDtypeStruct((bsz, st, ss_pad), jnp.float32),
        ),
        scratch_shapes=[
            pltpu.VMEM((bblk, scratch_rows, hid), jnp.float32),   # conv padding
            pltpu.VMEM((bblk, ss_pad, emb), MXU_DTYPE),           # padded keys
        ],
        compiler_params=pltpu.CompilerParams(
            dimension_semantics=("parallel",),        # batch blocks -> both TCs
            vmem_limit_bytes=_vmem_limit_bytes(),
        ),
    )(x.astype(jnp.float32), y.astype(jnp.float32), *flat)

    return out_p[:, :, :out_dim], attn_p[:, :, :ss]


# --------------------------------------------------------------------------
if __name__ == "__main__":
    key = jax.random.PRNGKey(0)
    kx, ky, kp = jax.random.split(key, 3)

    B, S_SRC, S_TRG = 2, 8, 8
    SRC_FEAT, TRG_FEAT = 4, 4
    EMB, HID, OUT_DIM = 32, 32, 4
    KSIZE = 3
    N_ENC_LAYERS, N_DEC_LAYERS = 2, 2
    MAX_LEN = 64

    x = jax.random.normal(kx, (B, S_SRC, SRC_FEAT), jnp.float32)
    y = jax.random.normal(ky, (B, S_TRG, TRG_FEAT), jnp.float32)
    params = init_params(kp, SRC_FEAT, TRG_FEAT, EMB, HID, OUT_DIM, KSIZE,
                         N_ENC_LAYERS, N_DEC_LAYERS, MAX_LEN)

    fwd = jax.jit(functools.partial(seq2seq_forward, ksize=KSIZE))
    output, attn = fwd(params, x, y)
    jax.block_until_ready((output, attn))

    assert output.shape == (B, S_TRG, OUT_DIM)
    assert attn.shape == (B, S_TRG, S_SRC)
    assert bool(jnp.all(jnp.isfinite(output))) and bool(jnp.all(jnp.isfinite(attn)))
    # softmax rows sum to 1 (loose tol: approx EUP reciprocal + bf16 MXU inputs)
    assert bool(jnp.allclose(jnp.sum(attn, axis=-1), 1.0, atol=5e-3))

    print("KERNEL_OK")
</pallas_src>

<mosaic_0001>
module attributes {stable_mosaic.version = 11 : i64} {
  func.func @_seq2seq_kernel(%arg0: i32, %arg1: memref<2x8x4xf32, #tpu.memory_space<vmem>>, %arg2: memref<2x8x4xf32, #tpu.memory_space<vmem>>, %arg3: memref<4x32xbf16, #tpu.memory_space<vmem>>, %arg4: memref<1x32xf32, #tpu.memory_space<vmem>>, %arg5: memref<8x32xf32, #tpu.memory_space<vmem>>, %arg6: memref<32x32xbf16, #tpu.memory_space<vmem>>, %arg7: memref<1x32xf32, #tpu.memory_space<vmem>>, %arg8: memref<32x32xbf16, #tpu.memory_space<vmem>>, %arg9: memref<1x32xf32, #tpu.memory_space<vmem>>, %arg10: memref<2x96x64xbf16, #tpu.memory_space<vmem>>, %arg11: memref<2x1x64xf32, #tpu.memory_space<vmem>>, %arg12: memref<4x32xbf16, #tpu.memory_space<vmem>>, %arg13: memref<1x32xf32, #tpu.memory_space<vmem>>, %arg14: memref<8x32xf32, #tpu.memory_space<vmem>>, %arg15: memref<32x32xbf16, #tpu.memory_space<vmem>>, %arg16: memref<1x32xf32, #tpu.memory_space<vmem>>, %arg17: memref<32x32xbf16, #tpu.memory_space<vmem>>, %arg18: memref<1x32xf32, #tpu.memory_space<vmem>>, %arg19: memref<2x96x64xbf16, #tpu.memory_space<vmem>>, %arg20: memref<2x1x64xf32, #tpu.memory_space<vmem>>, %arg21: memref<2x32x32xbf16, #tpu.memory_space<vmem>>, %arg22: memref<2x1x32xf32, #tpu.memory_space<vmem>>, %arg23: memref<2x32x32xbf16, #tpu.memory_space<vmem>>, %arg24: memref<2x1x32xf32, #tpu.memory_space<vmem>>, %arg25: memref<32x128xbf16, #tpu.memory_space<vmem>>, %arg26: memref<1x128xf32, #tpu.memory_space<vmem>>, %arg27: memref<2x8x128xf32, #tpu.memory_space<vmem>>, %arg28: memref<2x8x128xf32, #tpu.memory_space<vmem>>, %arg29: memref<2x19x32xf32, #tpu.memory_space<vmem>>, %arg30: memref<2x128x32xbf16, #tpu.memory_space<vmem>>) attributes {dimension_semantics = [#tpu.dimension_semantics<parallel>], iteration_bounds = array<i64: 1>, scalar_prefetch = 0 : i64, scratch_operands = 2 : i64, tpu.core_type = #tpu.core_type<tc>, window_params = [{transform_indices = @transform_0, window_bounds = array<i64: 2, 8, 4>}, {transform_indices = @transform_1, window_bounds = array<i64: 2, 8, 4>}, {pipeline_mode = #tpu.pipeline_mode<synchronous>, transform_indices = @transform_2, window_bounds = array<i64: 4, 32>}, {pipeline_mode = #tpu.pipeline_mode<synchronous>, transform_indices = @transform_3, window_bounds = array<i64: 1, 32>}, {pipeline_mode = #tpu.pipeline_mode<synchronous>, transform_indices = @transform_4, window_bounds = array<i64: 8, 32>}, {pipeline_mode = #tpu.pipeline_mode<synchronous>, transform_indices = @transform_5, window_bounds = array<i64: 32, 32>}, {pipeline_mode = #tpu.pipeline_mode<synchronous>, transform_indices = @transform_6, window_bounds = array<i64: 1, 32>}, {pipeline_mode = #tpu.pipeline_mode<synchronous>, transform_indices = @transform_7, window_bounds = array<i64: 32, 32>}, {pipeline_mode = #tpu.pipeline_mode<synchronous>, transform_indices = @transform_8, window_bounds = array<i64: 1, 32>}, {pipeline_mode = #tpu.pipeline_mode<synchronous>, transform_indices = @transform_9, window_bounds = array<i64: 2, 96, 64>}, {pipeline_mode = #tpu.pipeline_mode<synchronous>, transform_indices = @transform_10, window_bounds = array<i64: 2, 1, 64>}, {pipeline_mode = #tpu.pipeline_mode<synchronous>, transform_indices = @transform_11, window_bounds = array<i64: 4, 32>}, {pipeline_mode = #tpu.pipeline_mode<synchronous>, transform_indices = @transform_12, window_bounds = array<i64: 1, 32>}, {pipeline_mode = #tpu.pipeline_mode<synchronous>, transform_indices = @transform_13, window_bounds = array<i64: 8, 32>}, {pipeline_mode = #tpu.pipeline_mode<synchronous>, transform_indices = @transform_14, window_bounds = array<i64: 32, 32>}, {pipeline_mode = #tpu.pipeline_mode<synchronous>, transform_indices = @transform_15, window_bounds = array<i64: 1, 32>}, {pipeline_mode = #tpu.pipeline_mode<synchronous>, transform_indices = @transform_16, window_bounds = array<i64: 32, 32>}, {pipeline_mode = #tpu.pipeline_mode<synchronous>, transform_indices = @transform_17, window_bounds = array<i64: 1, 32>}, {pipeline_mode = #tpu.pipeline_mode<synchronous>, transform_indices = @transform_18, window_bounds = array<i64: 2, 96, 64>}, {pipeline_mode = #tpu.pipeline_mode<synchronous>, transform_indices = @transform_19, window_bounds = array<i64: 2, 1, 64>}, {pipeline_mode = #tpu.pipeline_mode<synchronous>, transform_indices = @transform_20, window_bounds = array<i64: 2, 32, 32>}, {pipeline_mode = #tpu.pipeline_mode<synchronous>, transform_indices = @transform_21, window_bounds = array<i64: 2, 1, 32>}, {pipeline_mode = #tpu.pipeline_mode<synchronous>, transform_indices = @transform_22, window_bounds = array<i64: 2, 32, 32>}, {pipeline_mode = #tpu.pipeline_mode<synchronous>, transform_indices = @transform_23, window_bounds = array<i64: 2, 1, 32>}, {pipeline_mode = #tpu.pipeline_mode<synchronous>, transform_indices = @transform_24, window_bounds = array<i64: 32, 128>}, {pipeline_mode = #tpu.pipeline_mode<synchronous>, transform_indices = @transform_25, window_bounds = array<i64: 1, 128>}, {transform_indices = @transform_26, window_bounds = array<i64: 2, 8, 128>}, {transform_indices = @transform_27, window_bounds = array<i64: 2, 8, 128>}]} {
    %cst = arith.constant 0.000000e+00 : f32
    %0 = vector.broadcast %cst : f32 to vector<2x2x32xf32>
    %c0 = arith.constant 0 : index
    %c6 = arith.constant 6 : index
    %c0_0 = arith.constant 0 : index
    %1 = vector.load %arg29[%c0, %c6, %c0_0] : memref<2x19x32xf32, #tpu.memory_space<vmem>>, vector<2x2x32xf32>
    tpu.vector_store %arg29[%c0, %c6, %c0_0], %0 {strides = array<i32>} : memref<2x19x32xf32, #tpu.memory_space<vmem>>, vector<2x2x32xf32>,
    %cst_1 = arith.constant 0.000000e+00 : f32
    %2 = vector.broadcast %cst_1 : f32 to vector<2x1x32xf32>
    %c0_2 = arith.constant 0 : index
    %c16 = arith.constant 16 : index
    %c0_3 = arith.constant 0 : index
    %3 = vector.load %arg29[%c0_2, %c16, %c0_3] : memref<2x19x32xf32, #tpu.memory_space<vmem>>, vector<2x1x32xf32>
    tpu.vector_store %arg29[%c0_2, %c16, %c0_3], %2 {strides = array<i32>} : memref<2x19x32xf32, #tpu.memory_space<vmem>>, vector<2x1x32xf32>,
    %c0_4 = arith.constant 0 : index
    %c0_5 = arith.constant 0 : index
    %c0_6 = arith.constant 0 : index
    %4 = vector.load %arg1[%c0_4, %c0_5, %c0_6] : memref<2x8x4xf32, #tpu.memory_space<vmem>>, vector<2x8x4xf32>
    %5 = vector.shape_cast %4 : vector<2x8x4xf32> to vector<16x4xf32>
    %c0_7 = arith.constant 0 : index
    %c0_8 = arith.constant 0 : index
    %6 = vector.load %arg3[%c0_7, %c0_8] : memref<4x32xbf16, #tpu.memory_space<vmem>>, vector<4x32xbf16>
    %7 = arith.truncf %5 : vector<16x4xf32> to vector<16x4xbf16>
    %cst_9 = arith.constant dense<0.000000e+00> : vector<16x32xf32>
    %8 = tpu.matmul %7, %6, %cst_9 {dimension_numbers = #tpu.dot_dimension_numbers<[1], [0], [0], [1], [0, 0, 1, 1], [], []>} : vector<16x4xbf16>, vector<4x32xbf16>, vector<16x32xf32> -> vector<16x32xf32>
    %c0_10 = arith.constant 0 : index
    %c0_11 = arith.constant 0 : index
    %9 = vector.load %arg4[%c0_10, %c0_11] : memref<1x32xf32, #tpu.memory_space<vmem>>, vector<1x32xf32>
    %10 = vector.broadcast %9 : vector<1x32xf32> to vector<16x32xf32>
    %11 = arith.addf %8, %10 : vector<16x32xf32>
    %12 = vector.shape_cast %11 : vector<16x32xf32> to vector<2x8x32xf32>
    %c0_12 = arith.constant 0 : index
    %c0_13 = arith.constant 0 : index
    %13 = vector.load %arg5[%c0_12, %c0_13] : memref<8x32xf32, #tpu.memory_space<vmem>>, vector<8x32xf32>
    %14 = vector.shape_cast %13 : vector<8x32xf32> to vector<1x8x32xf32>
    %15 = vector.broadcast %14 : vector<1x8x32xf32> to vector<2x8x32xf32>
    %16 = arith.addf %12, %15 : vector<2x8x32xf32>
    %17 = vector.shape_cast %16 : vector<2x8x32xf32> to vector<16x32xf32>
    %c0_14 = arith.constant 0 : index
    %c0_15 = arith.constant 0 : index
    %18 = vector.load %arg6[%c0_14, %c0_15] : memref<32x32xbf16, #tpu.memory_space<vmem>>, vector<32x32xbf16>
    %19 = arith.truncf %17 : vector<16x32xf32> to vector<16x32xbf16>
    %cst_16 = arith.constant dense<0.000000e+00> : vector<16x32xf32>
    %20 = tpu.matmul %19, %18, %cst_16 {dimension_numbers = #tpu.dot_dimension_numbers<[1], [0], [0], [1], [0, 0, 1, 1], [], []>} : vector<16x32xbf16>, vector<32x32xbf16>, vector<16x32xf32> -> vector<16x32xf32>
    %c0_17 = arith.constant 0 : index
    %c0_18 = arith.constant 0 : index
    %21 = vector.load %arg7[%c0_17, %c0_18] : memref<1x32xf32, #tpu.memory_space<vmem>>, vector<1x32xf32>
    %22 = vector.broadcast %21 : vector<1x32xf32> to vector<16x32xf32>
    %23 = arith.addf %20, %22 : vector<16x32xf32>
    %24 = vector.shape_cast %23 : vector<16x32xf32> to vector<2x8x32xf32>
    %c0_19 = arith.constant 0 : index
    %c8 = arith.constant 8 : index
    %c0_20 = arith.constant 0 : index
    %25 = vector.load %arg29[%c0_19, %c8, %c0_20] : memref<2x19x32xf32, #tpu.memory_space<vmem>>, vector<2x8x32xf32>
    tpu.vector_store %arg29[%c0_19, %c8, %c0_20], %24 {strides = array<i32>} : memref<2x19x32xf32, #tpu.memory_space<vmem>>, vector<2x8x32xf32>,
    %c0_21 = arith.constant 0 : index
    %c7 = arith.constant 7 : index
    %c0_22 = arith.constant 0 : index
    %26 = vector.load %arg29[%c0_21, %c7, %c0_22] : memref<2x19x32xf32, #tpu.memory_space<vmem>>, vector<2x8x32xf32>
    %27 = vector.shape_cast %26 : vector<2x8x32xf32> to vector<16x32xf32>
    %c0_23 = arith.constant 0 : index
    %c0_24 = arith.constant 0 : index
    %c0_25 = arith.constant 0 : index
    %28 = vector.load %arg10[%c0_23, %c0_24, %c0_25] : memref<2x96x64xbf16, #tpu.memory_space<vmem>>, vector<1x32x64xbf16>
    %29 = vector.shape_cast %28 : vector<1x32x64xbf16> to vector<32x64xbf16>
    %30 = arith.truncf %27 : vector<16x32xf32> to vector<16x32xbf16>
    %cst_26 = arith.constant dense<0.000000e+00> : vector<16x64xf32>
    %31 = tpu.matmul %30, %29, %cst_26 {dimension_numbers = #tpu.dot_dimension_numbers<[1], [0], [0], [1], [0, 0, 1, 1], [], []>} : vector<16x32xbf16>, vector<32x64xbf16>, vector<16x64xf32> -> vector<16x64xf32>
    %c0_27 = arith.constant 0 : index
    %c8_28 = arith.constant 8 : index
    %c0_29 = arith.constant 0 : index
    %32 = vector.load %arg29[%c0_27, %c8_28, %c0_29] : memref<2x19x32xf32, #tpu.memory_space<vmem>>, vector<2x8x32xf32>
    %33 = vector.shape_cast %32 : vector<2x8x32xf32> to vector<16x32xf32>
    %c0_30 = arith.constant 0 : index
    %c32 = arith.constant 32 : index
    %c0_31 = arith.constant 0 : index
    %34 = vector.load %arg10[%c0_30, %c32, %c0_31] : memref<2x96x64xbf16, #tpu.memory_space<vmem>>, vector<1x32x64xbf16>
    %35 = vector.shape_cast %34 : vector<1x32x64xbf16> to vector<32x64xbf16>
    %36 = arith.truncf %33 : vector<16x32xf32> to vector<16x32xbf16>
    %cst_32 = arith.constant dense<0.000000e+00> : vector<16x64xf32>
    %37 = tpu.matmul %36, %35, %cst_32 {dimension_numbers = #tpu.dot_dimension_numbers<[1], [0], [0], [1], [0, 0, 1, 1], [], []>} : vector<16x32xbf16>, vector<32x64xbf16>, vector<16x64xf32> -> vector<16x64xf32>
    %38 = arith.addf %31, %37 : vector<16x64xf32>
    %c0_33 = arith.constant 0 : index
    %c9 = arith.constant 9 : index
    %c0_34 = arith.constant 0 : index
    %39 = vector.load %arg29[%c0_33, %c9, %c0_34] : memref<2x19x32xf32, #tpu.memory_space<vmem>>, vector<2x8x32xf32>
    %40 = vector.shape_cast %39 : vector<2x8x32xf32> to vector<16x32xf32>
    %c0_35 = arith.constant 0 : index
    %c64 = arith.constant 64 : index
    %c0_36 = arith.constant 0 : index
    %41 = vector.load %arg10[%c0_35, %c64, %c0_36] : memref<2x96x64xbf16, #tpu.memory_space<vmem>>, vector<1x32x64xbf16>
    %42 = vector.shape_cast %41 : vector<1x32x64xbf16> to vector<32x64xbf16>
    %43 = arith.truncf %40 : vector<16x32xf32> to vector<16x32xbf16>
    %cst_37 = arith.constant dense<0.000000e+00> : vector<16x64xf32>
    %44 = tpu.matmul %43, %42, %cst_37 {dimension_numbers = #tpu.dot_dimension_numbers<[1], [0], [0], [1], [0, 0, 1, 1], [], []>} : vector<16x32xbf16>, vector<32x64xbf16>, vector<16x64xf32> -> vector<16x64xf32>
    %45 = arith.addf %38, %44 : vector<16x64xf32>
    %c0_38 = arith.constant 0 : index
    %c0_39 = arith.constant 0 : index
    %c0_40 = arith.constant 0 : index
    %46 = vector.load %arg11[%c0_38, %c0_39, %c0_40] : memref<2x1x64xf32, #tpu.memory_space<vmem>>, vector<1x1x64xf32>
    %47 = vector.shape_cast %46 : vector<1x1x64xf32> to vector<1x64xf32>
    %48 = vector.broadcast %47 : vector<1x64xf32> to vector<16x64xf32>
    %49 = arith.addf %45, %48 : vector<16x64xf32>
    %50 = vector.extract_strided_slice %49 {offsets = [0, 0], sizes = [16, 32], strides = [1, 1]} : vector<16x64xf32> to vector<16x32xf32>
    %51 = vector.extract_strided_slice %49 {offsets = [0, 32], sizes = [16, 32], strides = [1, 1]} : vector<16x64xf32> to vector<16x32xf32>
    %52 = arith.negf %51 : vector<16x32xf32>
    %53 = math.exp %52 : vector<16x32xf32>
    %cst_41 = arith.constant 1.000000e+00 : f32
    %54 = vector.broadcast %cst_41 : f32 to vector<16x32xf32>
    %55 = arith.addf %54, %53 : vector<16x32xf32>
    %56 = arith.divf %54, %55 : vector<16x32xf32>
    %57 = arith.mulf %50, %56 : vector<16x32xf32>
    %58 = arith.addf %57, %23 : vector<16x32xf32>
    %cst_42 = arith.constant 0.707106769 : f32
    %59 = vector.broadcast %cst_42 : f32 to vector<16x32xf32>
    %60 = arith.mulf %58, %59 : vector<16x32xf32>
    %61 = vector.shape_cast %60 : vector<16x32xf32> to vector<2x8x32xf32>
    %c0_43 = arith.constant 0 : index
    %c8_44 = arith.constant 8 : index
    %c0_45 = arith.constant 0 : index
    %62 = vector.load %arg29[%c0_43, %c8_44, %c0_45] : memref<2x19x32xf32, #tpu.memory_space<vmem>>, vector<2x8x32xf32>
    tpu.vector_store %arg29[%c0_43, %c8_44, %c0_45], %61 {strides = array<i32>} : memref<2x19x32xf32, #tpu.memory_space<vmem>>, vector<2x8x32xf32>,
    %c0_46 = arith.constant 0 : index
    %c7_47 = arith.constant 7 : index
    %c0_48 = arith.constant 0 : index
    %63 = vector.load %arg29[%c0_46, %c7_47, %c0_48] : memref<2x19x32xf32, #tpu.memory_space<vmem>>, vector<2x8x32xf32>
    %64 = vector.shape_cast %63 : vector<2x8x32xf32> to vector<16x32xf32>
    %c1 = arith.constant 1 : index
    %c0_49 = arith.constant 0 : index
    %c0_50 = arith.constant 0 : index
    %65 = vector.load %arg10[%c1, %c0_49, %c0_50] : memref<2x96x64xbf16, #tpu.memory_space<vmem>>, vector<1x32x64xbf16>
    %66 = vector.shape_cast %65 : vector<1x32x64xbf16> to vector<32x64xbf16>
    %67 = arith.truncf %64 : vector<16x32xf32> to vector<16x32xbf16>
    %cst_51 = arith.constant dense<0.000000e+00> : vector<16x64xf32>
    %68 = tpu.matmul %67, %66, %cst_51 {dimension_numbers = #tpu.dot_dimension_numbers<[1], [0], [0], [1], [0, 0, 1, 1], [], []>} : vector<16x32xbf16>, vector<32x64xbf16>, vector<16x64xf32> -> vector<16x64xf32>
    %c0_52 = arith.constant 0 : index
    %c8_53 = arith.constant 8 : index
    %c0_54 = arith.constant 0 : index
    %69 = vector.load %arg29[%c0_52, %c8_53, %c0_54] : memref<2x19x32xf32, #tpu.memory_space<vmem>>, vector<2x8x32xf32>
    %70 = vector.shape_cast %69 : vector<2x8x32xf32> to vector<16x32xf32>
    %c1_55 = arith.constant 1 : index
    %c32_56 = arith.constant 32 : index
    %c0_57 = arith.constant 0 : index
    %71 = vector.load %arg10[%c1_55, %c32_56, %c0_57] : memref<2x96x64xbf16, #tpu.memory_space<vmem>>, vector<1x32x64xbf16>
    %72 = vector.shape_cast %71 : vector<1x32x64xbf16> to vector<32x64xbf16>
    %73 = arith.truncf %70 : vector<16x32xf32> to vector<16x32xbf16>
    %cst_58 = arith.constant dense<0.000000e+00> : vector<16x64xf32>
    %74 = tpu.matmul %73, %72, %cst_58 {dimension_numbers = #tpu.dot_dimension_numbers<[1], [0], [0], [1], [0, 0, 1, 1], [], []>} : vector<16x32xbf16>, vector<32x64xbf16>, vector<16x64xf32> -> vector<16x64xf32>
    %75 = arith.addf %68, %74 : vector<16x64xf32>
    %c0_59 = arith.constant 0 : index
    %c9_60 = arith.constant 9 : index
    %c0_61 = arith.constant 0 : index
    %76 = vector.load %arg29[%c0_59, %c9_60, %c0_61] : memref<2x19x32xf32, #tpu.memory_space<vmem>>, vector<2x8x32xf32>
    %77 = vector.shape_cast %76 : vector<2x8x32xf32> to vector<16x32xf32>
    %c1_62 = arith.constant 1 : index
    %c64_63 = arith.constant 64 : index
    %c0_64 = arith.constant 0 : index
    %78 = vector.load %arg10[%c1_62, %c64_63, %c0_64] : memref<2x96x64xbf16, #tpu.memory_space<vmem>>, vector<1x32x64xbf16>
    %79 = vector.shape_cast %78 : vector<1x32x64xbf16> to vector<32x64xbf16>
    %80 = arith.truncf %77 : vector<16x32xf32> to vector<16x32xbf16>
    %cst_65 = arith.constant dense<0.000000e+00> : vector<16x64xf32>
    %81 = tpu.matmul %80, %79, %cst_65 {dimension_numbers = #tpu.dot_dimension_numbers<[1], [0], [0], [1], [0, 0, 1, 1], [], []>} : vector<16x32xbf16>, vector<32x64xbf16>, vector<16x64xf32> -> vector<16x64xf32>
    %82 = arith.addf %75, %81 : vector<16x64xf32>
    %c1_66 = arith.constant 1 : index
    %c0_67 = arith.constant 0 : index
    %c0_68 = arith.constant 0 : index
    %83 = vector.load %arg11[%c1_66, %c0_67, %c0_68] : memref<2x1x64xf32, #tpu.memory_space<vmem>>, vector<1x1x64xf32>
    %84 = vector.shape_cast %83 : vector<1x1x64xf32> to vector<1x64xf32>
    %85 = vector.broadcast %84 : vector<1x64xf32> to vector<16x64xf32>
    %86 = arith.addf %82, %85 : vector<16x64xf32>
    %87 = vector.extract_strided_slice %86 {offsets = [0, 0], sizes = [16, 32], strides = [1, 1]} : vector<16x64xf32> to vector<16x32xf32>
    %88 = vector.extract_strided_slice %86 {offsets = [0, 32], sizes = [16, 32], strides = [1, 1]} : vector<16x64xf32> to vector<16x32xf32>
    %89 = arith.negf %88 : vector<16x32xf32>
    %90 = math.exp %89 : vector<16x32xf32>
    %cst_69 = arith.constant 1.000000e+00 : f32
    %91 = vector.broadcast %cst_69 : f32 to vector<16x32xf32>
    %92 = arith.addf %91, %90 : vector<16x32xf32>
    %93 = arith.divf %91, %92 : vector<16x32xf32>
    %94 = arith.mulf %87, %93 : vector<16x32xf32>
    %95 = arith.addf %94, %60 : vector<16x32xf32>
    %cst_70 = arith.constant 0.707106769 : f32
    %96 = vector.broadcast %cst_70 : f32 to vector<16x32xf32>
    %97 = arith.mulf %95, %96 : vector<16x32xf32>
    %c0_71 = arith.constant 0 : index
    %c0_72 = arith.constant 0 : index
    %98 = vector.load %arg8[%c0_71, %c0_72] : memref<32x32xbf16, #tpu.memory_space<vmem>>, vector<32x32xbf16>
    %99 = arith.truncf %97 : vector<16x32xf32> to vector<16x32xbf16>
    %cst_73 = arith.constant dense<0.000000e+00> : vector<16x32xf32>
    %100 = tpu.matmul %99, %98, %cst_73 {dimension_numbers = #tpu.dot_dimension_numbers<[1], [0], [0], [1], [0, 0, 1, 1], [], []>} : vector<16x32xbf16>, vector<32x32xbf16>, vector<16x32xf32> -> vector<16x32xf32>
    %c0_74 = arith.constant 0 : index
    %c0_75 = arith.constant 0 : index
    %101 = vector.load %arg9[%c0_74, %c0_75] : memref<1x32xf32, #tpu.memory_space<vmem>>, vector<1x32xf32>
    %102 = vector.broadcast %101 : vector<1x32xf32> to vector<16x32xf32>
    %103 = arith.addf %100, %102 : vector<16x32xf32>
    %104 = arith.addf %103, %17 : vector<16x32xf32>
    %cst_76 = arith.constant 0.707106769 : f32
    %105 = vector.broadcast %cst_76 : f32 to vector<16x32xf32>
    %106 = arith.mulf %104, %105 : vector<16x32xf32>
    %cst_77 = arith.constant 0.000000e+00 : bf16
    %107 = vector.broadcast %cst_77 : bf16 to vector<2x120x32xbf16>
    %c0_78 = arith.constant 0 : index
    %c8_79 = arith.constant 8 : index
    %c0_80 = arith.constant 0 : index
    %108 = vector.load %arg30[%c0_78, %c8_79, %c0_80] : memref<2x128x32xbf16, #tpu.memory_space<vmem>>, vector<2x120x32xbf16>
    tpu.vector_store %arg30[%c0_78, %c8_79, %c0_80], %107 {strides = array<i32>} : memref<2x128x32xbf16, #tpu.memory_space<vmem>>, vector<2x120x32xbf16>,
    %109 = vector.shape_cast %103 : vector<16x32xf32> to vector<2x8x32xf32>
    %110 = arith.truncf %109 : vector<2x8x32xf32> to vector<2x8x32xbf16>
    %c0_81 = arith.constant 0 : index
    %c0_82 = arith.constant 0 : index
    %c0_83 = arith.constant 0 : index
    %111 = vector.load %arg30[%c0_81, %c0_82, %c0_83] : memref<2x128x32xbf16, #tpu.memory_space<vmem>>, vector<2x8x32xbf16>
    tpu.vector_store %arg30[%c0_81, %c0_82, %c0_83], %110 {strides = array<i32>} : memref<2x128x32xbf16, #tpu.memory_space<vmem>>, vector<2x8x32xbf16>,
    %c0_84 = arith.constant 0 : index
    %c0_85 = arith.constant 0 : index
    %c0_86 = arith.constant 0 : index
    %112 = vector.load %arg30[%c0_84, %c0_85, %c0_86] : memref<2x128x32xbf16, #tpu.memory_space<vmem>>, vector<2x128x32xbf16>
    %113 = vector.shape_cast %106 : vector<16x32xf32> to vector<2x8x32xf32>
    %114 = arith.truncf %113 : vector<2x8x32xf32> to vector<2x8x32xbf16>
    %c0_87 = arith.constant 0 : index
    %c0_88 = arith.constant 0 : index
    %c0_89 = arith.constant 0 : index
    %115 = vector.load %arg2[%c0_87, %c0_88, %c0_89] : memref<2x8x4xf32, #tpu.memory_space<vmem>>, vector<2x8x4xf32>
    %116 = vector.shape_cast %115 : vector<2x8x4xf32> to vector<16x4xf32>
    %c0_90 = arith.constant 0 : index
    %c0_91 = arith.constant 0 : index
    %117 = vector.load %arg12[%c0_90, %c0_91] : memref<4x32xbf16, #tpu.memory_space<vmem>>, vector<4x32xbf16>
    %118 = arith.truncf %116 : vector<16x4xf32> to vector<16x4xbf16>
    %cst_92 = arith.constant dense<0.000000e+00> : vector<16x32xf32>
    %119 = tpu.matmul %118, %117, %cst_92 {dimension_numbers = #tpu.dot_dimension_numbers<[1], [0], [0], [1], [0, 0, 1, 1], [], []>} : vector<16x4xbf16>, vector<4x32xbf16>, vector<16x32xf32> -> vector<16x32xf32>
    %c0_93 = arith.constant 0 : index
    %c0_94 = arith.constant 0 : index
    %120 = vector.load %arg13[%c0_93, %c0_94] : memref<1x32xf32, #tpu.memory_space<vmem>>, vector<1x32xf32>
    %121 = vector.broadcast %120 : vector<1x32xf32> to vector<16x32xf32>
    %122 = arith.addf %119, %121 : vector<16x32xf32>
    %123 = vector.shape_cast %122 : vector<16x32xf32> to vector<2x8x32xf32>
    %c0_95 = arith.constant 0 : index
    %c0_96 = arith.constant 0 : index
    %124 = vector.load %arg14[%c0_95, %c0_96] : memref<8x32xf32, #tpu.memory_space<vmem>>, vector<8x32xf32>
    %125 = vector.shape_cast %124 : vector<8x32xf32> to vector<1x8x32xf32>
    %126 = vector.broadcast %125 : vector<1x8x32xf32> to vector<2x8x32xf32>
    %127 = arith.addf %123, %126 : vector<2x8x32xf32>
    %128 = vector.shape_cast %127 : vector<2x8x32xf32> to vector<16x32xf32>
    %c0_97 = arith.constant 0 : index
    %c0_98 = arith.constant 0 : index
    %129 = vector.load %arg15[%c0_97, %c0_98] : memref<32x32xbf16, #tpu.memory_space<vmem>>, vector<32x32xbf16>
    %130 = arith.truncf %128 : vector<16x32xf32> to vector<16x32xbf16>
    %cst_99 = arith.constant dense<0.000000e+00> : vector<16x32xf32>
    %131 = tpu.matmul %130, %129, %cst_99 {dimension_numbers = #tpu.dot_dimension_numbers<[1], [0], [0], [1], [0, 0, 1, 1], [], []>} : vector<16x32xbf16>, vector<32x32xbf16>, vector<16x32xf32> -> vector<16x32xf32>
    %c0_100 = arith.constant 0 : index
    %c0_101 = arith.constant 0 : index
    %132 = vector.load %arg16[%c0_100, %c0_101] : memref<1x32xf32, #tpu.memory_space<vmem>>, vector<1x32xf32>
    %133 = vector.broadcast %132 : vector<1x32xf32> to vector<16x32xf32>
    %134 = arith.addf %131, %133 : vector<16x32xf32>
    %135 = tpu.iota {dimensions = array<i32: 2>} : vector<2x8x128xi32>
    %c8_i32 = arith.constant 8 : i32
    %136 = vector.broadcast %c8_i32 : i32 to vector<2x8x128xi32>
    %137 = arith.cmpi slt, %135, %136 : vector<2x8x128xi32>
    %138 = vector.shape_cast %134 : vector<16x32xf32> to vector<2x8x32xf32>
    %c0_102 = arith.constant 0 : index
    %c8_103 = arith.constant 8 : index
    %c0_104 = arith.constant 0 : index
    %139 = vector.load %arg29[%c0_102, %c8_103, %c0_104] : memref<2x19x32xf32, #tpu.memory_space<vmem>>, vector<2x8x32xf32>
    tpu.vector_store %arg29[%c0_102, %c8_103, %c0_104], %138 {strides = array<i32>} : memref<2x19x32xf32, #tpu.memory_space<vmem>>, vector<2x8x32xf32>,
    %c0_105 = arith.constant 0 : index
    %c6_106 = arith.constant 6 : index
    %c0_107 = arith.constant 0 : index
    %140 = vector.load %arg29[%c0_105, %c6_106, %c0_107] : memref<2x19x32xf32, #tpu.memory_space<vmem>>, vector<2x8x32xf32>
    %141 = vector.shape_cast %140 : vector<2x8x32xf32> to vector<16x32xf32>
    %c0_108 = arith.constant 0 : index
    %c0_109 = arith.constant 0 : index
    %c0_110 = arith.constant 0 : index
    %142 = vector.load %arg19[%c0_108, %c0_109, %c0_110] : memref<2x96x64xbf16, #tpu.memory_space<vmem>>, vector<1x32x64xbf16>
    %143 = vector.shape_cast %142 : vector<1x32x64xbf16> to vector<32x64xbf16>
    %144 = arith.truncf %141 : vector<16x32xf32> to vector<16x32xbf16>
    %cst_111 = arith.constant dense<0.000000e+00> : vector<16x64xf32>
    %145 = tpu.matmul %144, %143, %cst_111 {dimension_numbers = #tpu.dot_dimension_numbers<[1], [0], [0], [1], [0, 0, 1, 1], [], []>} : vector<16x32xbf16>, vector<32x64xbf16>, vector<16x64xf32> -> vector<16x64xf32>
    %c0_112 = arith.constant 0 : index
    %c7_113 = arith.constant 7 : index
    %c0_114 = arith.constant 0 : index
    %146 = vector.load %arg29[%c0_112, %c7_113, %c0_114] : memref<2x19x32xf32, #tpu.memory_space<vmem>>, vector<2x8x32xf32>
    %147 = vector.shape_cast %146 : vector<2x8x32xf32> to vector<16x32xf32>
    %c0_115 = arith.constant 0 : index
    %c32_116 = arith.constant 32 : index
    %c0_117 = arith.constant 0 : index
    %148 = vector.load %arg19[%c0_115, %c32_116, %c0_117] : memref<2x96x64xbf16, #tpu.memory_space<vmem>>, vector<1x32x64xbf16>
    %149 = vector.shape_cast %148 : vector<1x32x64xbf16> to vector<32x64xbf16>
    %150 = arith.truncf %147 : vector<16x32xf32> to vector<16x32xbf16>
    %cst_118 = arith.constant dense<0.000000e+00> : vector<16x64xf32>
    %151 = tpu.matmul %150, %149, %cst_118 {dimension_numbers = #tpu.dot_dimension_numbers<[1], [0], [0], [1], [0, 0, 1, 1], [], []>} : vector<16x32xbf16>, vector<32x64xbf16>, vector<16x64xf32> -> vector<16x64xf32>
    %152 = arith.addf %145, %151 : vector<16x64xf32>
    %c0_119 = arith.constant 0 : index
    %c8_120 = arith.constant 8 : index
    %c0_121 = arith.constant 0 : index
    %153 = vector.load %arg29[%c0_119, %c8_120, %c0_121] : memref<2x19x32xf32, #tpu.memory_space<vmem>>, vector<2x8x32xf32>
    %154 = vector.shape_cast %153 : vector<2x8x32xf32> to vector<16x32xf32>
    %c0_122 = arith.constant 0 : index
    %c64_123 = arith.constant 64 : index
    %c0_124 = arith.constant 0 : index
    %155 = vector.load %arg19[%c0_122, %c64_123, %c0_124] : memref<2x96x64xbf16, #tpu.memory_space<vmem>>, vector<1x32x64xbf16>
    %156 = vector.shape_cast %155 : vector<1x32x64xbf16> to vector<32x64xbf16>
    %157 = arith.truncf %154 : vector<16x32xf32> to vector<16x32xbf16>
    %cst_125 = arith.constant dense<0.000000e+00> : vector<16x64xf32>
    %158 = tpu.matmul %157, %156, %cst_125 {dimension_numbers = #tpu.dot_dimension_numbers<[1], [0], [0], [1], [0, 0, 1, 1], [], []>} : vector<16x32xbf16>, vector<32x64xbf16>, vector<16x64xf32> -> vector<16x64xf32>
    %159 = arith.addf %152, %158 : vector<16x64xf32>
    %c0_126 = arith.constant 0 : index
    %c0_127 = arith.constant 0 : index
    %c0_128 = arith.constant 0 : index
    %160 = vector.load %arg20[%c0_126, %c0_127, %c0_128] : memref<2x1x64xf32, #tpu.memory_space<vmem>>, vector<1x1x64xf32>
    %161 = vector.shape_cast %160 : vector<1x1x64xf32> to vector<1x64xf32>
    %162 = vector.broadcast %161 : vector<1x64xf32> to vector<16x64xf32>
    %163 = arith.addf %159, %162 : vector<16x64xf32>
    %164 = vector.extract_strided_slice %163 {offsets = [0, 0], sizes = [16, 32], strides = [1, 1]} : vector<16x64xf32> to vector<16x32xf32>
    %165 = vector.extract_strided_slice %163 {offsets = [0, 32], sizes = [16, 32], strides = [1, 1]} : vector<16x64xf32> to vector<16x32xf32>
    %166 = arith.negf %165 : vector<16x32xf32>
    %167 = math.exp %166 : vector<16x32xf32>
    %cst_129 = arith.constant 1.000000e+00 : f32
    %168 = vector.broadcast %cst_129 : f32 to vector<16x32xf32>
    %169 = arith.addf %168, %167 : vector<16x32xf32>
    %170 = arith.divf %168, %169 : vector<16x32xf32>
    %171 = arith.mulf %164, %170 : vector<16x32xf32>
    %c0_130 = arith.constant 0 : index
    %c0_131 = arith.constant 0 : index
    %c0_132 = arith.constant 0 : index
    %172 = vector.load %arg21[%c0_130, %c0_131, %c0_132] : memref<2x32x32xbf16, #tpu.memory_space<vmem>>, vector<1x32x32xbf16>
    %173 = vector.shape_cast %172 : vector<1x32x32xbf16> to vector<32x32xbf16>
    %174 = arith.truncf %171 : vector<16x32xf32> to vector<16x32xbf16>
    %cst_133 = arith.constant dense<0.000000e+00> : vector<16x32xf32>
    %175 = tpu.matmul %174, %173, %cst_133 {dimension_numbers = #tpu.dot_dimension_numbers<[1], [0], [0], [1], [0, 0, 1, 1], [], []>} : vector<16x32xbf16>, vector<32x32xbf16>, vector<16x32xf32> -> vector<16x32xf32>
    %c0_134 = arith.constant 0 : index
    %c0_135 = arith.constant 0 : index
    %c0_136 = arith.constant 0 : index
    %176 = vector.load %arg22[%c0_134, %c0_135, %c0_136] : memref<2x1x32xf32, #tpu.memory_space<vmem>>, vector<1x1x32xf32>
    %177 = vector.shape_cast %176 : vector<1x1x32xf32> to vector<1x32xf32>
    %178 = vector.broadcast %177 : vector<1x32xf32> to vector<16x32xf32>
    %179 = arith.addf %175, %178 : vector<16x32xf32>
    %180 = vector.shape_cast %179 : vector<16x32xf32> to vector<2x8x32xf32>
    %181 = arith.addf %180, %127 : vector<2x8x32xf32>
    %cst_137 = arith.constant 0.707106769 : f32
    %182 = vector.broadcast %cst_137 : f32 to vector<2x8x32xf32>
    %183 = arith.mulf %181, %182 : vector<2x8x32xf32>
    %184 = arith.truncf %183 : vector<2x8x32xf32> to vector<2x8x32xbf16>
    "tpu.trace_start"() <{level = 10 : i32, message = "bqd,bkd->bqk"}> : () -> ()
    %cst_138 = arith.constant dense<0.000000e+00> : vector<2x8x128xf32>
    %185 = tpu.matmul %184, %112, %cst_138 {dimension_numbers = #tpu.dot_dimension_numbers<[2], [2], [1], [1], [0, 0, 0, 1, 1, 1], [0], [0]>} : vector<2x8x32xbf16>, vector<2x128x32xbf16>, vector<2x8x128xf32> -> vector<2x8x128xf32>
    %cst_139 = arith.constant -1.000000e+30 : f32
    "tpu.trace_stop"() : () -> ()
    %186 = vector.broadcast %cst_139 : f32 to vector<2x8x128xf32>
    %187 = arith.select %137, %185, %186 : vector<2x8x128xi1>, vector<2x8x128xf32>
    %cst_140 = arith.constant dense<0xFF800000> : vector<2x8xf32>
    %188 = vector.multi_reduction <maximumf>, %187, %cst_140 [2] : vector<2x8x128xf32> to vector<2x8xf32>
    %189 = vector.shape_cast %188 : vector<2x8xf32> to vector<2x8x1xf32>
    %190 = vector.broadcast %189 : vector<2x8x1xf32> to vector<2x8x128xf32>
    %191 = arith.subf %187, %190 : vector<2x8x128xf32>
    %192 = math.exp %191 : vector<2x8x128xf32>
    %cst_141 = arith.constant dense<0.000000e+00> : vector<2x8xf32>
    %193 = vector.multi_reduction <add>, %192, %cst_141 [2] : vector<2x8x128xf32> to vector<2x8xf32>
    %194 = vector.shape_cast %193 : vector<2x8xf32> to vector<2x8x1xf32>
    %195 = tpu.reciprocal %194 {approx = true} : vector<2x8x1xf32> -> vector<2x8x1xf32>
    %196 = vector.broadcast %195 : vector<2x8x1xf32> to vector<2x8x128xf32>
    %197 = arith.mulf %192, %196 : vector<2x8x128xf32>
    %198 = vector.extract_strided_slice %197 {offsets = [0, 0, 0], sizes = [2, 8, 8], strides = [1, 1, 1]} : vector<2x8x128xf32> to vector<2x8x8xf32>
    %199 = arith.truncf %198 : vector<2x8x8xf32> to vector<2x8x8xbf16>
    "tpu.trace_start"() <{level = 10 : i32, message = "bqk,bkd->bqd"}> : () -> ()
    %cst_142 = arith.constant dense<0.000000e+00> : vector<2x8x32xf32>
    %200 = tpu.matmul %199, %114, %cst_142 {dimension_numbers = #tpu.dot_dimension_numbers<[2], [1], [1], [2], [0, 0, 0, 1, 1, 2], [0], [0]>} : vector<2x8x8xbf16>, vector<2x8x32xbf16>, vector<2x8x32xf32> -> vector<2x8x32xf32>
    "tpu.trace_stop"() : () -> ()
    %201 = vector.shape_cast %200 : vector<2x8x32xf32> to vector<16x32xf32>
    %c0_143 = arith.constant 0 : index
    %c0_144 = arith.constant 0 : index
    %c0_145 = arith.constant 0 : index
    %202 = vector.load %arg23[%c0_143, %c0_144, %c0_145] : memref<2x32x32xbf16, #tpu.memory_space<vmem>>, vector<1x32x32xbf16>
    %203 = vector.shape_cast %202 : vector<1x32x32xbf16> to vector<32x32xbf16>
    %204 = arith.truncf %201 : vector<16x32xf32> to vector<16x32xbf16>
    %cst_146 = arith.constant dense<0.000000e+00> : vector<16x32xf32>
    %205 = tpu.matmul %204, %203, %cst_146 {dimension_numbers = #tpu.dot_dimension_numbers<[1], [0], [0], [1], [0, 0, 1, 1], [], []>} : vector<16x32xbf16>, vector<32x32xbf16>, vector<16x32xf32> -> vector<16x32xf32>
    %c0_147 = arith.constant 0 : index
    %c0_148 = arith.constant 0 : index
    %c0_149 = arith.constant 0 : index
    %206 = vector.load %arg24[%c0_147, %c0_148, %c0_149] : memref<2x1x32xf32, #tpu.memory_space<vmem>>, vector<1x1x32xf32>
    %207 = vector.shape_cast %206 : vector<1x1x32xf32> to vector<1x32xf32>
    %208 = vector.broadcast %207 : vector<1x32xf32> to vector<16x32xf32>
    %209 = arith.addf %205, %208 : vector<16x32xf32>
    %210 = arith.addf %171, %209 : vector<16x32xf32>
    %cst_150 = arith.constant 0.707106769 : f32
    %211 = vector.broadcast %cst_150 : f32 to vector<16x32xf32>
    %212 = arith.mulf %210, %211 : vector<16x32xf32>
    %213 = arith.addf %212, %134 : vector<16x32xf32>
    %cst_151 = arith.constant 0.707106769 : f32
    %214 = vector.broadcast %cst_151 : f32 to vector<16x32xf32>
    %215 = arith.mulf %213, %214 : vector<16x32xf32>
    %216 = vector.shape_cast %215 : vector<16x32xf32> to vector<2x8x32xf32>
    %c0_152 = arith.constant 0 : index
    %c8_153 = arith.constant 8 : index
    %c0_154 = arith.constant 0 : index
    %217 = vector.load %arg29[%c0_152, %c8_153, %c0_154] : memref<2x19x32xf32, #tpu.memory_space<vmem>>, vector<2x8x32xf32>
    tpu.vector_store %arg29[%c0_152, %c8_153, %c0_154], %216 {strides = array<i32>} : memref<2x19x32xf32, #tpu.memory_space<vmem>>, vector<2x8x32xf32>,
    %c0_155 = arith.constant 0 : index
    %c6_156 = arith.constant 6 : index
    %c0_157 = arith.constant 0 : index
    %218 = vector.load %arg29[%c0_155, %c6_156, %c0_157] : memref<2x19x32xf32, #tpu.memory_space<vmem>>, vector<2x8x32xf32>
    %219 = vector.shape_cast %218 : vector<2x8x32xf32> to vector<16x32xf32>
    %c1_158 = arith.constant 1 : index
    %c0_159 = arith.constant 0 : index
    %c0_160 = arith.constant 0 : index
    %220 = vector.load %arg19[%c1_158, %c0_159, %c0_160] : memref<2x96x64xbf16, #tpu.memory_space<vmem>>, vector<1x32x64xbf16>
    %221 = vector.shape_cast %220 : vector<1x32x64xbf16> to vector<32x64xbf16>
    %222 = arith.truncf %219 : vector<16x32xf32> to vector<16x32xbf16>
    %cst_161 = arith.constant dense<0.000000e+00> : vector<16x64xf32>
    %223 = tpu.matmul %222, %221, %cst_161 {dimension_numbers = #tpu.dot_dimension_numbers<[1], [0], [0], [1], [0, 0, 1, 1], [], []>} : vector<16x32xbf16>, vector<32x64xbf16>, vector<16x64xf32> -> vector<16x64xf32>
    %c0_162 = arith.constant 0 : index
    %c7_163 = arith.constant 7 : index
    %c0_164 = arith.constant 0 : index
    %224 = vector.load %arg29[%c0_162, %c7_163, %c0_164] : memref<2x19x32xf32, #tpu.memory_space<vmem>>, vector<2x8x32xf32>
    %225 = vector.shape_cast %224 : vector<2x8x32xf32> to vector<16x32xf32>
    %c1_165 = arith.constant 1 : index
    %c32_166 = arith.constant 32 : index
    %c0_167 = arith.constant 0 : index
    %226 = vector.load %arg19[%c1_165, %c32_166, %c0_167] : memref<2x96x64xbf16, #tpu.memory_space<vmem>>, vector<1x32x64xbf16>
    %227 = vector.shape_cast %226 : vector<1x32x64xbf16> to vector<32x64xbf16>
    %228 = arith.truncf %225 : vector<16x32xf32> to vector<16x32xbf16>
    %cst_168 = arith.constant dense<0.000000e+00> : vector<16x64xf32>
    %229 = tpu.matmul %228, %227, %cst_168 {dimension_numbers = #tpu.dot_dimension_numbers<[1], [0], [0], [1], [0, 0, 1, 1], [], []>} : vector<16x32xbf16>, vector<32x64xbf16>, vector<16x64xf32> -> vector<16x64xf32>
    %230 = arith.addf %223, %229 : vector<16x64xf32>
    %c0_169 = arith.constant 0 : index
    %c8_170 = arith.constant 8 : index
    %c0_171 = arith.constant 0 : index
    %231 = vector.load %arg29[%c0_169, %c8_170, %c0_171] : memref<2x19x32xf32, #tpu.memory_space<vmem>>, vector<2x8x32xf32>
    %232 = vector.shape_cast %231 : vector<2x8x32xf32> to vector<16x32xf32>
    %c1_172 = arith.constant 1 : index
    %c64_173 = arith.constant 64 : index
    %c0_174 = arith.constant 0 : index
    %233 = vector.load %arg19[%c1_172, %c64_173, %c0_174] : memref<2x96x64xbf16, #tpu.memory_space<vmem>>, vector<1x32x64xbf16>
    %234 = vector.shape_cast %233 : vector<1x32x64xbf16> to vector<32x64xbf16>
    %235 = arith.truncf %232 : vector<16x32xf32> to vector<16x32xbf16>
    %cst_175 = arith.constant dense<0.000000e+00> : vector<16x64xf32>
    %236 = tpu.matmul %235, %234, %cst_175 {dimension_numbers = #tpu.dot_dimension_numbers<[1], [0], [0], [1], [0, 0, 1, 1], [], []>} : vector<16x32xbf16>, vector<32x64xbf16>, vector<16x64xf32> -> vector<16x64xf32>
    %237 = arith.addf %230, %236 : vector<16x64xf32>
    %c1_176 = arith.constant 1 : index
    %c0_177 = arith.constant 0 : index
    %c0_178 = arith.constant 0 : index
    %238 = vector.load %arg20[%c1_176, %c0_177, %c0_178] : memref<2x1x64xf32, #tpu.memory_space<vmem>>, vector<1x1x64xf32>
    %239 = vector.shape_cast %238 : vector<1x1x64xf32> to vector<1x64xf32>
    %240 = vector.broadcast %239 : vector<1x64xf32> to vector<16x64xf32>
    %241 = arith.addf %237, %240 : vector<16x64xf32>
    %242 = vector.extract_strided_slice %241 {offsets = [0, 0], sizes = [16, 32], strides = [1, 1]} : vector<16x64xf32> to vector<16x32xf32>
    %243 = vector.extract_strided_slice %241 {offsets = [0, 32], sizes = [16, 32], strides = [1, 1]} : vector<16x64xf32> to vector<16x32xf32>
    %244 = arith.negf %243 : vector<16x32xf32>
    %245 = math.exp %244 : vector<16x32xf32>
    %cst_179 = arith.constant 1.000000e+00 : f32
    %246 = vector.broadcast %cst_179 : f32 to vector<16x32xf32>
    %247 = arith.addf %246, %245 : vector<16x32xf32>
    %248 = arith.divf %246, %247 : vector<16x32xf32>
    %249 = arith.mulf %242, %248 : vector<16x32xf32>
    %c1_180 = arith.constant 1 : index
    %c0_181 = arith.constant 0 : index
    %c0_182 = arith.constant 0 : index
    %250 = vector.load %arg21[%c1_180, %c0_181, %c0_182] : memref<2x32x32xbf16, #tpu.memory_space<vmem>>, vector<1x32x32xbf16>
    %251 = vector.shape_cast %250 : vector<1x32x32xbf16> to vector<32x32xbf16>
    %252 = arith.truncf %249 : vector<16x32xf32> to vector<16x32xbf16>
    %cst_183 = arith.constant dense<0.000000e+00> : vector<16x32xf32>
    %253 = tpu.matmul %252, %251, %cst_183 {dimension_numbers = #tpu.dot_dimension_numbers<[1], [0], [0], [1], [0, 0, 1, 1], [], []>} : vector<16x32xbf16>, vector<32x32xbf16>, vector<16x32xf32> -> vector<16x32xf32>
    %c1_184 = arith.constant 1 : index
    %c0_185 = arith.constant 0 : index
    %c0_186 = arith.constant 0 : index
    %254 = vector.load %arg22[%c1_184, %c0_185, %c0_186] : memref<2x1x32xf32, #tpu.memory_space<vmem>>, vector<1x1x32xf32>
    %255 = vector.shape_cast %254 : vector<1x1x32xf32> to vector<1x32xf32>
    %256 = vector.broadcast %255 : vector<1x32xf32> to vector<16x32xf32>
    %257 = arith.addf %253, %256 : vector<16x32xf32>
    %258 = vector.shape_cast %257 : vector<16x32xf32> to vector<2x8x32xf32>
    %259 = arith.addf %258, %127 : vector<2x8x32xf32>
    %cst_187 = arith.constant 0.707106769 : f32
    %260 = vector.broadcast %cst_187 : f32 to vector<2x8x32xf32>
    %261 = arith.mulf %259, %260 : vector<2x8x32xf32>
    %262 = arith.truncf %261 : vector<2x8x32xf32> to vector<2x8x32xbf16>
    "tpu.trace_start"() <{level = 10 : i32, message = "bqd,bkd->bqk"}> : () -> ()
    %cst_188 = arith.constant dense<0.000000e+00> : vector<2x8x128xf32>
    %263 = tpu.matmul %262, %112, %cst_188 {dimension_numbers = #tpu.dot_dimension_numbers<[2], [2], [1], [1], [0, 0, 0, 1, 1, 1], [0], [0]>} : vector<2x8x32xbf16>, vector<2x128x32xbf16>, vector<2x8x128xf32> -> vector<2x8x128xf32>
    %cst_189 = arith.constant -1.000000e+30 : f32
    "tpu.trace_stop"() : () -> ()
    %264 = vector.broadcast %cst_189 : f32 to vector<2x8x128xf32>
    %265 = arith.select %137, %263, %264 : vector<2x8x128xi1>, vector<2x8x128xf32>
    %cst_190 = arith.constant dense<0xFF800000> : vector<2x8xf32>
    %266 = vector.multi_reduction <maximumf>, %265, %cst_190 [2] : vector<2x8x128xf32> to vector<2x8xf32>
    %267 = vector.shape_cast %266 : vector<2x8xf32> to vector<2x8x1xf32>
    %268 = vector.broadcast %267 : vector<2x8x1xf32> to vector<2x8x128xf32>
    %269 = arith.subf %265, %268 : vector<2x8x128xf32>
    %270 = math.exp %269 : vector<2x8x128xf32>
    %cst_191 = arith.constant dense<0.000000e+00> : vector<2x8xf32>
    %271 = vector.multi_reduction <add>, %270, %cst_191 [2] : vector<2x8x128xf32> to vector<2x8xf32>
    %272 = vector.shape_cast %271 : vector<2x8xf32> to vector<2x8x1xf32>
    %273 = tpu.reciprocal %272 {approx = true} : vector<2x8x1xf32> -> vector<2x8x1xf32>
    %274 = vector.broadcast %273 : vector<2x8x1xf32> to vector<2x8x128xf32>
    %275 = arith.mulf %270, %274 : vector<2x8x128xf32>
    %276 = vector.extract_strided_slice %275 {offsets = [0, 0, 0], sizes = [2, 8, 8], strides = [1, 1, 1]} : vector<2x8x128xf32> to vector<2x8x8xf32>
    %277 = arith.truncf %276 : vector<2x8x8xf32> to vector<2x8x8xbf16>
    "tpu.trace_start"() <{level = 10 : i32, message = "bqk,bkd->bqd"}> : () -> ()
    %cst_192 = arith.constant dense<0.000000e+00> : vector<2x8x32xf32>
    %278 = tpu.matmul %277, %114, %cst_192 {dimension_numbers = #tpu.dot_dimension_numbers<[2], [1], [1], [2], [0, 0, 0, 1, 1, 2], [0], [0]>} : vector<2x8x8xbf16>, vector<2x8x32xbf16>, vector<2x8x32xf32> -> vector<2x8x32xf32>
    "tpu.trace_stop"() : () -> ()
    %279 = vector.shape_cast %278 : vector<2x8x32xf32> to vector<16x32xf32>
    %c1_193 = arith.constant 1 : index
    %c0_194 = arith.constant 0 : index
    %c0_195 = arith.constant 0 : index
    %280 = vector.load %arg23[%c1_193, %c0_194, %c0_195] : memref<2x32x32xbf16, #tpu.memory_space<vmem>>, vector<1x32x32xbf16>
    %281 = vector.shape_cast %280 : vector<1x32x32xbf16> to vector<32x32xbf16>
    %282 = arith.truncf %279 : vector<16x32xf32> to vector<16x32xbf16>
    %cst_196 = arith.constant dense<0.000000e+00> : vector<16x32xf32>
    %283 = tpu.matmul %282, %281, %cst_196 {dimension_numbers = #tpu.dot_dimension_numbers<[1], [0], [0], [1], [0, 0, 1, 1], [], []>} : vector<16x32xbf16>, vector<32x32xbf16>, vector<16x32xf32> -> vector<16x32xf32>
    %c1_197 = arith.constant 1 : index
    %c0_198 = arith.constant 0 : index
    %c0_199 = arith.constant 0 : index
    %284 = vector.load %arg24[%c1_197, %c0_198, %c0_199] : memref<2x1x32xf32, #tpu.memory_space<vmem>>, vector<1x1x32xf32>
    %285 = vector.shape_cast %284 : vector<1x1x32xf32> to vector<1x32xf32>
    %286 = vector.broadcast %285 : vector<1x32xf32> to vector<16x32xf32>
    %287 = arith.addf %283, %286 : vector<16x32xf32>
    %288 = arith.addf %249, %287 : vector<16x32xf32>
    %cst_200 = arith.constant 0.707106769 : f32
    %289 = vector.broadcast %cst_200 : f32 to vector<16x32xf32>
    %290 = arith.mulf %288, %289 : vector<16x32xf32>
    %291 = arith.addf %290, %215 : vector<16x32xf32>
    %cst_201 = arith.constant 0.707106769 : f32
    %292 = vector.broadcast %cst_201 : f32 to vector<16x32xf32>
    %293 = arith.mulf %291, %292 : vector<16x32xf32>
    %c0_202 = arith.constant 0 : index
    %c0_203 = arith.constant 0 : index
    %294 = vector.load %arg17[%c0_202, %c0_203] : memref<32x32xbf16, #tpu.memory_space<vmem>>, vector<32x32xbf16>
    %295 = arith.truncf %293 : vector<16x32xf32> to vector<16x32xbf16>
    %cst_204 = arith.constant dense<0.000000e+00> : vector<16x32xf32>
    %296 = tpu.matmul %295, %294, %cst_204 {dimension_numbers = #tpu.dot_dimension_numbers<[1], [0], [0], [1], [0, 0, 1, 1], [], []>} : vector<16x32xbf16>, vector<32x32xbf16>, vector<16x32xf32> -> vector<16x32xf32>
    %c0_205 = arith.constant 0 : index
    %c0_206 = arith.constant 0 : index
    %297 = vector.load %arg18[%c0_205, %c0_206] : memref<1x32xf32, #tpu.memory_space<vmem>>, vector<1x32xf32>
    %298 = vector.broadcast %297 : vector<1x32xf32> to vector<16x32xf32>
    %299 = arith.addf %296, %298 : vector<16x32xf32>
    %c0_207 = arith.constant 0 : index
    %c0_208 = arith.constant 0 : index
    %300 = vector.load %arg25[%c0_207, %c0_208] : memref<32x128xbf16, #tpu.memory_space<vmem>>, vector<32x128xbf16>
    %301 = arith.truncf %299 : vector<16x32xf32> to vector<16x32xbf16>
    %cst_209 = arith.constant dense<0.000000e+00> : vector<16x128xf32>
    %302 = tpu.matmul %301, %300, %cst_209 {dimension_numbers = #tpu.dot_dimension_numbers<[1], [0], [0], [1], [0, 0, 1, 1], [], []>} : vector<16x32xbf16>, vector<32x128xbf16>, vector<16x128xf32> -> vector<16x128xf32>
    %c0_210 = arith.constant 0 : index
    %c0_211 = arith.constant 0 : index
    %303 = vector.load %arg26[%c0_210, %c0_211] : memref<1x128xf32, #tpu.memory_space<vmem>>, vector<1x128xf32>
    %304 = vector.broadcast %303 : vector<1x128xf32> to vector<16x128xf32>
    %305 = arith.addf %302, %304 : vector<16x128xf32>
    %306 = vector.shape_cast %305 : vector<16x128xf32> to vector<2x8x128xf32>
    %c0_212 = arith.constant 0 : index
    %c0_213 = arith.constant 0 : index
    %c0_214 = arith.constant 0 : index
    %307 = vector.load %arg27[%c0_212, %c0_213, %c0_214] : memref<2x8x128xf32, #tpu.memory_space<vmem>>, vector<2x8x128xf32>
    tpu.vector_store %arg27[%c0_212, %c0_213, %c0_214], %306 {strides = array<i32>} : memref<2x8x128xf32, #tpu.memory_space<vmem>>, vector<2x8x128xf32>,
    %c0_215 = arith.constant 0 : index
    %c0_216 = arith.constant 0 : index
    %c0_217 = arith.constant 0 : index
    %308 = vector.load %arg28[%c0_215, %c0_216, %c0_217] : memref<2x8x128xf32, #tpu.memory_space<vmem>>, vector<2x8x128xf32>
    tpu.vector_store %arg28[%c0_215, %c0_216, %c0_217], %275 {strides = array<i32>} : memref<2x8x128xf32, #tpu.memory_space<vmem>>, vector<2x8x128xf32>,
    return
  }
  func.func @transform_0(%arg0: i32) -> (i32, i32, i32) {
    %c0_i32 = arith.constant 0 : i32
    %c0_i32_0 = arith.constant 0 : i32
    %c0_i32_1 = arith.constant 0 : i32
    return %arg0, %c0_i32, %c0_i32_0 : i32, i32, i32
  }
  func.func @transform_1(%arg0: i32) -> (i32, i32, i32) {
    %c0_i32 = arith.constant 0 : i32
    %c0_i32_0 = arith.constant 0 : i32
    %c0_i32_1 = arith.constant 0 : i32
    return %arg0, %c0_i32, %c0_i32_0 : i32, i32, i32
  }
  func.func @transform_2(%arg0: i32) -> (i32, i32) {
    %c0_i32 = arith.constant 0 : i32
    %c0_i32_0 = arith.constant 0 : i32
    %c0_i32_1 = arith.constant 0 : i32
    return %c0_i32, %c0_i32_0 : i32, i32
  }
  func.func @transform_3(%arg0: i32) -> (i32, i32) {
    %c0_i32 = arith.constant 0 : i32
    %c0_i32_0 = arith.constant 0 : i32
    %c0_i32_1 = arith.constant 0 : i32
    return %c0_i32, %c0_i32_0 : i32, i32
  }
  func.func @transform_4(%arg0: i32) -> (i32, i32) {
    %c0_i32 = arith.constant 0 : i32
    %c0_i32_0 = arith.constant 0 : i32
    %c0_i32_1 = arith.constant 0 : i32
    return %c0_i32, %c0_i32_0 : i32, i32
  }
  func.func @transform_5(%arg0: i32) -> (i32, i32) {
    %c0_i32 = arith.constant 0 : i32
    %c0_i32_0 = arith.constant 0 : i32
    %c0_i32_1 = arith.constant 0 : i32
    return %c0_i32, %c0_i32_0 : i32, i32
  }
  func.func @transform_6(%arg0: i32) -> (i32, i32) {
    %c0_i32 = arith.constant 0 : i32
    %c0_i32_0 = arith.constant 0 : i32
    %c0_i32_1 = arith.constant 0 : i32
    return %c0_i32, %c0_i32_0 : i32, i32
  }
  func.func @transform_7(%arg0: i32) -> (i32, i32) {
    %c0_i32 = arith.constant 0 : i32
    %c0_i32_0 = arith.constant 0 : i32
    %c0_i32_1 = arith.constant 0 : i32
    return %c0_i32, %c0_i32_0 : i32, i32
  }
  func.func @transform_8(%arg0: i32) -> (i32, i32) {
    %c0_i32 = arith.constant 0 : i32
    %c0_i32_0 = arith.constant 0 : i32
    %c0_i32_1 = arith.constant 0 : i32
    return %c0_i32, %c0_i32_0 : i32, i32
  }
  func.func @transform_9(%arg0: i32) -> (i32, i32, i32) {
    %c0_i32 = arith.constant 0 : i32
    %c0_i32_0 = arith.constant 0 : i32
    %c0_i32_1 = arith.constant 0 : i32
    %c0_i32_2 = arith.constant 0 : i32
    return %c0_i32, %c0_i32_0, %c0_i32_1 : i32, i32, i32
  }
  func.func @transform_10(%arg0: i32) -> (i32, i32, i32) {
    %c0_i32 = arith.constant 0 : i32
    %c0_i32_0 = arith.constant 0 : i32
    %c0_i32_1 = arith.constant 0 : i32
    %c0_i32_2 = arith.constant 0 : i32
    return %c0_i32, %c0_i32_0, %c0_i32_1 : i32, i32, i32
  }
  func.func @transform_11(%arg0: i32) -> (i32, i32) {
    %c0_i32 = arith.constant 0 : i32
    %c0_i32_0 = arith.constant 0 : i32
    %c0_i32_1 = arith.constant 0 : i32
    return %c0_i32, %c0_i32_0 : i32, i32
  }
  func.func @transform_12(%arg0: i32) -> (i32, i32) {
    %c0_i32 = arith.constant 0 : i32
    %c0_i32_0 = arith.constant 0 : i32
    %c0_i32_1 = arith.constant 0 : i32
    return %c0_i32, %c0_i32_0 : i32, i32
  }
  func.func @transform_13(%arg0: i32) -> (i32, i32) {
    %c0_i32 = arith.constant 0 : i32
    %c0_i32_0 = arith.constant 0 : i32
    %c0_i32_1 = arith.constant 0 : i32
    return %c0_i32, %c0_i32_0 : i32, i32
  }
  func.func @transform_14(%arg0: i32) -> (i32, i32) {
    %c0_i32 = arith.constant 0 : i32
    %c0_i32_0 = arith.constant 0 : i32
    %c0_i32_1 = arith.constant 0 : i32
    return %c0_i32, %c0_i32_0 : i32, i32
  }
  func.func @transform_15(%arg0: i32) -> (i32, i32) {
    %c0_i32 = arith.constant 0 : i32
    %c0_i32_0 = arith.constant 0 : i32
    %c0_i32_1 = arith.constant 0 : i32
    return %c0_i32, %c0_i32_0 : i32, i32
  }
  func.func @transform_16(%arg0: i32) -> (i32, i32) {
    %c0_i32 = arith.constant 0 : i32
    %c0_i32_0 = arith.constant 0 : i32
    %c0_i32_1 = arith.constant 0 : i32
    return %c0_i32, %c0_i32_0 : i32, i32
  }
  func.func @transform_17(%arg0: i32) -> (i32, i32) {
    %c0_i32 = arith.constant 0 : i32
    %c0_i32_0 = arith.constant 0 : i32
    %c0_i32_1 = arith.constant 0 : i32
    return %c0_i32, %c0_i32_0 : i32, i32
  }
  func.func @transform_18(%arg0: i32) -> (i32, i32, i32) {
    %c0_i32 = arith.constant 0 : i32
    %c0_i32_0 = arith.constant 0 : i32
    %c0_i32_1 = arith.constant 0 : i32
    %c0_i32_2 = arith.constant 0 : i32
    return %c0_i32, %c0_i32_0, %c0_i32_1 : i32, i32, i32
  }
  func.func @transform_19(%arg0: i32) -> (i32, i32, i32) {
    %c0_i32 = arith.constant 0 : i32
    %c0_i32_0 = arith.constant 0 : i32
    %c0_i32_1 = arith.constant 0 : i32
    %c0_i32_2 = arith.constant 0 : i32
    return %c0_i32, %c0_i32_0, %c0_i32_1 : i32, i32, i32
  }
  func.func @transform_20(%arg0: i32) -> (i32, i32, i32) {
    %c0_i32 = arith.constant 0 : i32
    %c0_i32_0 = arith.constant 0 : i32
    %c0_i32_1 = arith.constant 0 : i32
    %c0_i32_2 = arith.constant 0 : i32
    return %c0_i32, %c0_i32_0, %c0_i32_1 : i32, i32, i32
  }
  func.func @transform_21(%arg0: i32) -> (i32, i32, i32) {
    %c0_i32 = arith.constant 0 : i32
    %c0_i32_0 = arith.constant 0 : i32
    %c0_i32_1 = arith.constant 0 : i32
    %c0_i32_2 = arith.constant 0 : i32
    return %c0_i32, %c0_i32_0, %c0_i32_1 : i32, i32, i32
  }
  func.func @transform_22(%arg0: i32) -> (i32, i32, i32) {
    %c0_i32 = arith.constant 0 : i32
    %c0_i32_0 = arith.constant 0 : i32
    %c0_i32_1 = arith.constant 0 : i32
    %c0_i32_2 = arith.constant 0 : i32
    return %c0_i32, %c0_i32_0, %c0_i32_1 : i32, i32, i32
  }
  func.func @transform_23(%arg0: i32) -> (i32, i32, i32) {
    %c0_i32 = arith.constant 0 : i32
    %c0_i32_0 = arith.constant 0 : i32
    %c0_i32_1 = arith.constant 0 : i32
    %c0_i32_2 = arith.constant 0 : i32
    return %c0_i32, %c0_i32_0, %c0_i32_1 : i32, i32, i32
  }
  func.func @transform_24(%arg0: i32) -> (i32, i32) {
    %c0_i32 = arith.constant 0 : i32
    %c0_i32_0 = arith.constant 0 : i32
    %c0_i32_1 = arith.constant 0 : i32
    return %c0_i32, %c0_i32_0 : i32, i32
  }
  func.func @transform_25(%arg0: i32) -> (i32, i32) {
    %c0_i32 = arith.constant 0 : i32
    %c0_i32_0 = arith.constant 0 : i32
    %c0_i32_1 = arith.constant 0 : i32
    return %c0_i32, %c0_i32_0 : i32, i32
  }
  func.func @transform_26(%arg0: i32) -> (i32, i32, i32) {
    %c0_i32 = arith.constant 0 : i32
    %c0_i32_0 = arith.constant 0 : i32
    %c0_i32_1 = arith.constant 0 : i32
    return %arg0, %c0_i32, %c0_i32_0 : i32, i32, i32
  }
  func.func @transform_27(%arg0: i32) -> (i32, i32, i32) {
    %c0_i32 = arith.constant 0 : i32
    %c0_i32_0 = arith.constant 0 : i32
    %c0_i32_1 = arith.constant 0 : i32
    return %arg0, %c0_i32, %c0_i32_0 : i32, i32, i32
  }
}

</mosaic_0001>

<bundles_post_ra>
// kernel: seq2seq_forward.1
= control target key start
LH: loop header
LB: loop body
LE: loop exit
PB: predicated region body
PF: predicated region fallthrough
CT: control target
= control target key end

     0   :  { %s2706_s0 = inlined_call_operand.vmem [shape: f32[2,8,4], index: 0, kind: input, shape index: {}]   ;;  %s2707_s1 = inlined_call_operand.vmem [shape: f32[2,8,4], index: 1, kind: input, shape index: {}]   ;;  %s2708_s2 = inlined_call_operand.vmem [shape: bf16[4,32], index: 2, kind: input, shape index: {}]   ;;  %s2709_s3 = inlined_call_operand.vmem [shape: f32[1,32], index: 3, kind: input, shape index: {}]   ;;  %s2710_s4 = inlined_call_operand.vmem [shape: f32[8,32], index: 4, kind: input, shape index: {}]   ;;  %s2711_s5 = inlined_call_operand.vmem [shape: bf16[32,32], index: 5, kind: input, shape index: {}]   ;;  %s2712_s6 = inlined_call_operand.vmem [shape: f32[1,32], index: 6, kind: input, shape index: {}]   ;;  %s2713_s7 = inlined_call_operand.vmem [shape: bf16[32,32], index: 7, kind: input, shape index: {}]   ;;  %s2714_s8 = inlined_call_operand.vmem [shape: f32[1,32], index: 8, kind: input, shape index: {}]   ;;  %s2715_s9 = inlined_call_operand.vmem [shape: bf16[2,96,64], index: 9, kind: input, shape index: {}]   ;;  %s2716_s10 = inlined_call_operand.vmem [shape: f32[2,1,64], index: 10, kind: input, shape index: {}]   ;;  %s2717_s11 = inlined_call_operand.vmem [shape: bf16[4,32], index: 11, kind: input, shape index: {}]   ;;  %s2718_s12 = inlined_call_operand.vmem [shape: f32[1,32], index: 12, kind: input, shape index: {}]   ;;  %s2719_s13 = inlined_call_operand.vmem [shape: f32[8,32], index: 13, kind: input, shape index: {}]   ;;  %s2720_s14 = inlined_call_operand.vmem [shape: bf16[32,32], index: 14, kind: input, shape index: {}]   ;;  %s2721_s15 = inlined_call_operand.vmem [shape: f32[1,32], index: 15, kind: input, shape index: {}]   ;;  %s2722_s16 = inlined_call_operand.vmem [shape: bf16[32,32], index: 16, kind: input, shape index: {}]   ;;  %s2723_s17 = inlined_call_operand.vmem [shape: f32[1,32], index: 17, kind: input, shape index: {}]   ;;  %s2724_s18 = inlined_call_operand.vmem [shape: bf16[2,96,64], index: 18, kind: input, shape index: {}]   ;;  %s2725_s19 = inlined_call_operand.vmem [shape: f32[2,1,64], index: 19, kind: input, shape index: {}]   ;;  %s2726_s20 = inlined_call_operand.vmem [shape: bf16[2,32,32], index: 20, kind: input, shape index: {}]   ;;  %s2727_s21 = inlined_call_operand.vmem [shape: f32[2,1,32], index: 21, kind: input, shape index: {}]   ;;  %s2728_s22 = inlined_call_operand.vmem [shape: bf16[2,32,32], index: 22, kind: input, shape index: {}]   ;;  %s2729_s23 = inlined_call_operand.vmem [shape: f32[2,1,32], index: 23, kind: input, shape index: {}]   ;;  %s2730_s24 = inlined_call_operand.vmem [shape: bf16[32,128], index: 24, kind: input, shape index: {}]   ;;  %s2731_s25 = inlined_call_operand.vmem [shape: f32[1,128], index: 25, kind: input, shape index: {}]   ;;  %s2732_s26 = inlined_call_operand.vmem [shape: f32[2,8,128], index: 26, kind: output, shape index: {0}]   ;;  %s2733_s27 = inlined_call_operand.hbm [shape: f32[2,8,128], index: 27, kind: output, shape index: {1}]  }
   0x1   :  { %2740 = sst [smem:[#allocation7_spill]] %s2706_s0 }
   0x2   :  { %2741 = sst [smem:[#allocation8_spill]] %s2707_s1 }
   0x3   :  { %2742 = sst [smem:[#allocation9_spill]] %s2708_s2 }
   0x4   :  { %2743 = sst [smem:[#allocation10_spill]] %s2709_s3 }
   0x5   :  { %2744 = sst [smem:[#allocation11_spill]] %s2710_s4 }
   0x6   :  { %2745 = sst [smem:[#allocation12_spill]] %s2711_s5 }
   0x7   :  { %2746 = sst [smem:[#allocation13_spill]] %s2712_s6 }
   0x8   :  { %2747 = sst [smem:[#allocation14_spill]] %s2713_s7 }
   0x9   :  { %2748 = sst [smem:[#allocation15_spill]] %s2714_s8 }
   0xa   :  { %2749 = sst [smem:[#allocation16_spill]] %s2715_s9 }
   0xb   :  { %2750 = sst [smem:[#allocation17_spill]] %s2716_s10 }
   0xc   :  { %2751 = sst [smem:[#allocation18_spill]] %s2717_s11 }
   0xd   :  { %s2752_s8 = sld [smem:[#allocation9_spill]]  ;;  %vm105_vm0 = vcmask 1041408   ;;  %vm101_vm1 = vcmask 31744  }
   0xe   :  { %s2753_s5 = sld [smem:[#allocation7_spill]] }
  0x13   :  { %v95_v0 = vld [vmem:[%s2752_s8] sm:$0x3] }
  0x14   :  { %v93_v1 = vld [vmem:[%s2753_s5] sm:$0xff]  ;;  %v107_v2 = vsel %vm105_vm0, %v95_v0, 0  ;;  %v94_v3 = vld [vmem:[%s2753_s5 + $0x8] sm:$0xff] }
  0x15   :  { %116 = vmatpush.bf16.msra.mxu0 %v107_v2  ;;  %v96_v4 = vpack.c.bf16 %v94_v3, %v93_v1 }
  0x18   :  { %1618 = vmatmul.msk.bf16.vlgmr.msra.gmra.mxu0 %vm101_vm1, %v96_v4 }
  0x19   :  { %33 = vsyncpa [#allocation5], 0  ;;  %s2754_s1 = sld [smem:[#allocation12_spill]]  ;;  %vm147_vm2 = vcmask 261120   ;;  %vm87_vm3 = vcmask 254976   ;;  %vm90_vm4 = vcmask 253952  }
  0x1a   :  { %s2755_s7 = sld [smem:[#allocation10_spill]]  ;;  %v2078_v16 = vmov 0.0   ;;  %s2079_s29 = smov 96  }
  0x1b   :  { %s2756_s30 = sld [smem:[#allocation11_spill]]  ;;  %88 = vst.msk [vmem:[#allocation2 + $0x6] sm:$0x3] %vm87_vm3, %v2078_v16  ;;  %s2081_s5 = smov [#allocation4]  }
  0x1c   :  { %89 = vst.msk [vmem:[#allocation2 + $0x1e] sm:$0x3] %vm87_vm3, %v2078_v16  ;;  %s2757_s28 = sld [smem:[#allocation16_spill]]  ;;  %s1602_s0 = sshll.u32 %s2081_s5, 4  ;;  %s1603_s0 = int_to_ptr.vmem [resolvable:$true] %s1602_s0 }
  0x1d   :  { %91 = vst.msk [vmem:[#allocation2 + $0x10] sm:$0x1] %vm90_vm4, %v2078_v16  ;;  %s2758_s9 = sld [smem:[#allocation13_spill]]  ;;  %s1604_s6 = sshll.u32 %s2733_s27, 4  ;;  %s1605_s6 = int_to_ptr.hbm [resolvable:$true] %s1604_s6 }
  0x1e   :  { %92 = vst.msk [vmem:[#allocation2 + $0x28] sm:$0x1] %vm90_vm4, %v2078_v16  ;;  %s2759_s10 = sld [smem:[#allocation17_spill]] }
  0x1f   :  { %v1926_v5 = vld [vmem:[%s2754_s1 + $0x8] sm:$0xff]  ;;  %v1925_v6 = vld [vmem:[%s2754_s1] sm:$0xff]  ;;  %s2761_s3 = sld [smem:[#allocation8_spill]] }
  0x20   :  { %157 = vmatpush.bf16.msra.mxu1 %v1926_v5  ;;  %v1989_v8 = vld [vmem:[%s2755_s7] ss:$0 sm:$0xff]  ;;  %s2763_s8 = sld [smem:[#allocation15_spill]] }
  0x21   :  { %v123_v10 = vld [vmem:[%s2756_s30] sm:$0xff]  ;;  %s2760_s30 = sld [smem:[#allocation18_spill]] }
  0x22   :  { %v1932_v17 = vld [vmem:[%s2757_s28 + $0x28] sm:$0xff]  ;;  %v1930_v18 = vld [vmem:[%s2757_s28 + $0x18] sm:$0xff]  ;;  %v1929_v20 = vld [vmem:[%s2757_s28 + $0x10] sm:$0xff] }
  0x23   :  { %v1928_v19 = vld [vmem:[%s2757_s28 + $0x8] sm:$0xff]  ;;  %267 = vmatpush.bf16.msrb.mxu0 %v1932_v17  ;;  %202 = vmatpush.bf16.msra.mxu2 %v1930_v18  ;;  %v1931_v21 = vld [vmem:[%s2757_s28 + $0x20] sm:$0xff]  ;;  %v1938_v16 = vld [vmem:[%s2757_s28 + $0x58] sm:$0xff] }
  0x24   :  { %158 = vmatpush.bf16.msra.mxu1 %v1925_v6  ;;  %231 = vmatpush.bf16.msra.mxu3 %v1928_v19  ;;  %v1927_v22 = vld [vmem:[%s2757_s28] sm:$0xff]  ;;  %v1933_v19 = vld [vmem:[%s2757_s28 + $0x30] sm:$0xff] }
  0x25   :  { %v1990_v23 = vld [vmem:[%s2758_s9] ss:$0 sm:$0xff] }
  0x26   :  { %v1991_v41 = vld [vmem:[%s2759_s10] ss:$0 sm:$0xff] }
  0x27   :  { %203 = vmatpush.bf16.msra.mxu2 %v1929_v20  ;;  %268 = vmatpush.bf16.msrb.mxu0 %v1931_v21  ;;  %v620_v17 = vld [vmem:[%s2760_s30] sm:$0x3]  ;;  %v1937_v20 = vld [vmem:[%s2757_s28 + $0x50] sm:$0xff] }
  0x28   :  { %232 = vmatpush.bf16.msra.mxu3 %v1927_v22  ;;  %v1935_v18 = vld [vmem:[%s2757_s28 + $0x40] sm:$0xff]  ;;  %v630_v21 = vsel %vm105_vm0, %v620_v17, 0 }
  0x2c   :  { %438 = vmatpush.bf16.msrb.mxu3 %v1938_v16 }
  0x30   :  { %439 = vmatpush.bf16.msrb.mxu3 %v1937_v20 }
  0x95   :  { %v118_v7 = vpop.f32.mrf.mxu0 }
  0x96   :  { %v119_v9 = vadd.f32 %v1989_v8, %v118_v7 }
  0x98   :  { %v2247_v13 = vadd.f32 %v123_v10, %v119_v9 }
  0x9d   :  { %v120_v11 = vpop.f32.mrf.mxu0 }
  0x9e   :  { %v121_v12 = vadd.f32 %v1989_v8, %v120_v11 }
  0xa0   :  { %v2249_v14 = vadd.f32 %v123_v10, %v121_v12  ;;  %v1936_v12 = vld [vmem:[%s2757_s28 + $0x48] sm:$0xff] }
  0xa1   :  { %373 = vmatpush.bf16.msrb.mxu1 %v1936_v12 }
  0xa2   :  { %v130_v15 = vpack.c.bf16 %v2249_v14, %v2247_v13 }
  0xa4   :  { %1627 = vmatmul.msk.bf16.vlgmr.msra.gmra.mxu1 %vm147_vm2, %v130_v15  ;;  %v1934_v15 = vld [vmem:[%s2757_s28 + $0x38] sm:$0xff]  ;;  %s2762_s28 = sld [smem:[#allocation14_spill]] }
  0xa5   :  { %402 = vmatpush.bf16.msrb.mxu2 %v1934_v15  ;;  %374 = vmatpush.bf16.msrb.mxu1 %v1935_v18 }
  0xa9   :  { %403 = vmatpush.bf16.msrb.mxu2 %v1933_v19  ;;  %639 = vmatpush.bf16.msra.mxu1 %v630_v21 }
 0x121   :  { %v160_v24 = vpop.f32.mrf.mxu1 }
 0x122   :  { %v2275_v25 = vadd.f32 %v1990_v23, %v160_v24 }
 0x124   :  { %165 = vst.msk [vmem:[#allocation2 + $0x8] sm:$0xff] %vm147_vm2, %v2275_v25 }
 0x129   :  { %v162_v26 = vpop.f32.mrf.mxu1 }
 0x12a   :  { %v2279_v27 = vadd.f32 %v1990_v23, %v162_v26 }
 0x12b   :  { %v174_v28 = vld [vmem:[#allocation2 + $0x8] sm:$0xff] }
 0x12c   :  { %166 = vst.msk [vmem:[#allocation2 + $0x20] sm:$0xff] %vm147_vm2, %v2279_v27  ;;  %v167_v29 = vld [vmem:[#allocation2 + $0x7] sm:$0xff] }
 0x12d   :  { %v239_v30 = vld [vmem:[#allocation2 + $0x9] sm:$0xff] }
 0x133   :  { %v175_v31 = vld [vmem:[#allocation2 + $0x20] sm:$0xff] }
 0x134   :  { %v168_v32 = vld [vmem:[#allocation2 + $0x1f] sm:$0xff]  ;;  %v180_v34 = vpack.c.bf16 %v175_v31, %v174_v28 }
 0x135   :  { %v240_v33 = vld [vmem:[#allocation2 + $0x21] sm:$0xff]  ;;  %v173_v35 = vpack.c.bf16 %v168_v32, %v167_v29 }
 0x136   :  { %v245_v36 = vpack.c.bf16 %v240_v33, %v239_v30  ;;  %1636 = vmatmul.msk.bf16.vlgmr.msra.gmra.mxu2 %vm147_vm2, %v180_v34 }
 0x137   :  { %1645 = vmatmul.msk.bf16.vlgmr.msra.gmra.mxu3 %vm147_vm2, %v173_v35 }
 0x138   :  { %1654 = vmatmul.msk.bf16.vlgmr.msrb.gmra.mxu0 %vm147_vm2, %v245_v36 }
 0x1b5   :  { %v270_v37 = vpop.f32.mrf.mxu0 }
 0x1b9   :  { %v205_v38 = vpop.f32.mrf.mxu2 }
 0x1ba   :  { %v234_v39 = vpop.f32.mrf.mxu3 }
 0x1bb   :  { %v235_v40 = vadd.f32 %v234_v39, %v205_v38 }
 0x1bd   :  { %v275_v42 = vadd.f32 %v270_v37, %v235_v40  ;;  %v272_v48 = vpop.f32.mrf.mxu0  ;;  %v619_v40 = vld [vmem:[%s2761_s3 + $0x8] sm:$0xff] }
 0x1bf   :  { %v2289_v43 = vadd.f32 %v1991_v41, %v275_v42  ;;  %v1958_v42 = vld [vmem:[%s2720_s14 + $0x8] sm:$0xff] }
 0x1c0   :  { %679 = vmatpush.bf16.msra.mxu2 %v1958_v42  ;;  %v1994_v42 = vld [vmem:[%s2721_s15] ss:$0 sm:$0xff] }
 0x1c1   :  { %v1655_v44 = vmul.f32 -1.442695, %v2289_v43  ;;  %v207_v45 = vpop.f32.mrf.mxu2 }
 0x1c2   :  { %v236_v46 = vpop.f32.mrf.mxu3 }
 0x1c3   :  { %2004 = vpow2.f32 %v1655_v44  ;;  %v237_v47 = vadd.f32 %v236_v46, %v207_v45 }
 0x1c5   :  { %v276_v49 = vadd.f32 %v272_v48, %v237_v47  ;;  %v1992_v48 = vld [vmem:[%s2759_s10 + $0x1] ss:$0 sm:$0xff]  ;;  %s2083_s10 = smov 8  }
 0x1c7   :  { %v282_v50 = vadd.f32 %v1991_v41, %v276_v49 }
 0x1c9   :  { %v2005_v51 = vpop.eup %2004  ;;  %v1656_v52 = vmul.f32 -1.442695, %v282_v50 }
 0x1ca   :  { %v289_v53 = vadd.f32 1.0, %v2005_v51 }
 0x1cb   :  { %2006 = vpow2.f32 %v1656_v52 }
 0x1cc   :  { %2008 = vrcp.f32 %v289_v53  ;;  %v302_v59 = vand.u32 2147483648, %v289_v53  ;;  %v300_v61 = vand.u32 2147483647, %v289_v53  ;;  %vm296_vm6 = vweird.f32 %v289_v53 }
 0x1ce   :  { %v303_v0 = vor.u32 1.1754944e-38, %v302_v59  ;;  %vm301_vm8 = vcmp.eq.f32.partialorder %v300_v61, 8.507059e+37  ;;  %v1993_v59 = vld [vmem:[%s2718_s12] ss:$0 sm:$0xff] }
 0x1d1   :  { %v2007_v54 = vpop.eup %2006 }
 0x1d2   :  { %v2009_v55 = vpop.eup %2008  ;;  %v290_v56 = vadd.f32 1.0, %v2007_v54 }
 0x1d3   :  { %v292_v57 = vmul.f32 %v2009_v55, %v289_v53  ;;  %vm297_vm5 = vweird.f32 %v2009_v55 }
 0x1d4   :  { %2010 = vrcp.f32 %v290_v56  ;;  %vm298_vm7 = vmor %vm296_vm6, %vm297_vm5  ;;  %v317_v5 = vand.u32 2147483648, %v290_v56  ;;  %v315_v7 = vand.u32 2147483647, %v290_v56  ;;  %vm311_vm10 = vweird.f32 %v290_v56 }
 0x1d5   :  { %v293_v58 = vsub.f32 1.0, %v292_v57  ;;  %vm549_vm6 = vcmask 257024  }
 0x1d6   :  { %v318_v9 = vor.u32 1.1754944e-38, %v317_v5  ;;  %vm316_vm12 = vcmp.eq.f32.partialorder %v315_v7, 8.507059e+37 }
 0x1d7   :  { %v294_v60 = vmul.f32 %v2009_v55, %v293_v58 }
 0x1d9   :  { %v295_v62 = vadd.f32 %v2009_v55, %v294_v60 }
 0x1da   :  { %v2011_v63 = vpop.eup %2010 }
 0x1db   :  { %v299_v1 = vsel %vm298_vm7, %v2009_v55, %v295_v62  ;;  %v307_v2 = vmul.f32 %v2011_v63, %v290_v56  ;;  %vm312_vm9 = vweird.f32 %v2011_v63  ;;  %vm1086_vm7 = vcmask 1043456  }
 0x1dc   :  { %v304_v3 = vsel %vm301_vm8, %v303_v0, %v299_v1  ;;  %vm313_vm11 = vmor %vm311_vm10, %vm312_vm9  ;;  %v646_v0 = vld [vmem:[%s2719_s13] sm:$0xff] }
 0x1dd   :  { %323 = vrot.lane.b32.xlu0 %v304_v3, %s2079_s29  ;;  %v308_v4 = vsub.f32 1.0, %v307_v2 }
 0x1df   :  { %v309_v6 = vmul.f32 %v2011_v63, %v308_v4 }
 0x1e1   :  { %v310_v8 = vadd.f32 %v2011_v63, %v309_v6 }
 0x1e3   :  { %v314_v10 = vsel %vm313_vm11, %v2011_v63, %v310_v8 }
 0x1e4   :  { %v319_v11 = vsel %vm316_vm12, %v318_v9, %v314_v10 }
 0x1e5   :  { %325 = vrot.lane.b32.xlu0 %v319_v11, %s2079_s29 }
 0x24f   :  { %v324_v22 = vpop.permute.xlu0 %323 }
 0x250   :  { %v329_v23 = vmul.f32 %v324_v22, %v2289_v43  ;;  %v1957_v43 = vld [vmem:[%s2720_s14] sm:$0xff] }
 0x251   :  { %680 = vmatpush.bf16.msra.mxu2 %v1957_v43 }
 0x252   :  { %v331_v24 = vadd.f32 %v329_v23, %v2275_v25 }
 0x254   :  { %v2318_v26 = vmul.f32 0.70710677, %v331_v24 }
 0x256   :  { %335 = vst.msk [vmem:[#allocation2 + $0x8] sm:$0xff] %vm147_vm2, %v2318_v26 }
 0x257   :  { %v326_v28 = vpop.permute.xlu0 %325 }
 0x258   :  { %v330_v29 = vmul.f32 %v326_v28, %v282_v50 }
 0x25a   :  { %v332_v30 = vadd.f32 %v330_v29, %v2279_v27  ;;  %v618_v27 = vld [vmem:[%s2761_s3] sm:$0xff] }
 0x25b   :  { %v621_v41 = vpack.c.bf16 %v619_v40, %v618_v27  ;;  %v1959_v27 = vld [vmem:[%s2724_s18] sm:$0xff] }
 0x25c   :  { %v2323_v31 = vmul.f32 0.70710677, %v332_v30 }
 0x25d   :  { %v345_v32 = vld [vmem:[#allocation2 + $0x8] sm:$0xff] }
 0x25e   :  { %336 = vst.msk [vmem:[#allocation2 + $0x20] sm:$0xff] %vm147_vm2, %v2323_v31  ;;  %v337_v33 = vld [vmem:[#allocation2 + $0x7] sm:$0xff] }
 0x25f   :  { %v410_v34 = vld [vmem:[#allocation2 + $0x9] sm:$0xff] }
 0x265   :  { %v346_v35 = vld [vmem:[#allocation2 + $0x20] sm:$0xff] }
 0x266   :  { %v338_v36 = vld [vmem:[#allocation2 + $0x1f] sm:$0xff]  ;;  %v351_v37 = vpack.c.bf16 %v346_v35, %v345_v32 }
 0x267   :  { %v411_v25 = vld [vmem:[#allocation2 + $0x21] sm:$0xff]  ;;  %v344_v38 = vpack.c.bf16 %v338_v36, %v337_v33  ;;  %v1962_v36 = vld [vmem:[%s2724_s18 + $0x18] sm:$0xff] }
 0x268   :  { %v416_v39 = vpack.c.bf16 %v411_v25, %v410_v34  ;;  %1673 = vmatmul.msk.bf16.vlgmr.msrb.gmra.mxu1 %vm147_vm2, %v351_v37  ;;  %v1940_v34 = vld [vmem:[%s2762_s28 + $0x8] sm:$0xff]  ;;  %v1939_v35 = vld [vmem:[%s2762_s28] sm:$0xff]  ;;  %727 = vmatpush.bf16.msra.mxu3 %v1962_v36  ;;  %v1961_v37 = vld [vmem:[%s2724_s18 + $0x10] sm:$0xff] }
 0x269   :  { %1682 = vmatmul.msk.bf16.vlgmr.msrb.gmra.mxu2 %vm147_vm2, %v344_v38  ;;  %537 = vmatpush.bf16.msra.mxu0 %v1940_v34  ;;  %v1960_v25 = vld [vmem:[%s2724_s18 + $0x8] sm:$0xff]  ;;  %v1995_v36 = vld [vmem:[%s2763_s8] ss:$0 sm:$0xff] }
 0x26a   :  { %1695 = vmatmul.msk.bf16.vlgmr.msrb.gmra.mxu3 %vm147_vm2, %v416_v39  ;;  %v1964_v38 = vld [vmem:[%s2724_s18 + $0x28] sm:$0xff]  ;;  %v1963_v39 = vld [vmem:[%s2724_s18 + $0x20] sm:$0xff] }
 0x26b   :  { %792 = vmatpush.bf16.msrb.mxu1 %v1964_v38 }
 0x26c   :  { %728 = vmatpush.bf16.msra.mxu3 %v1961_v37 }
 0x26d   :  { %538 = vmatpush.bf16.msra.mxu0 %v1939_v35  ;;  %v1965_v35 = vld [vmem:[%s2726_s20] sm:$0xff] }
 0x26f   :  { %793 = vmatpush.bf16.msrb.mxu1 %v1963_v39 }
 0x271   :  { %756 = vmatpush.bf16.msrb.mxu0 %v1960_v25 }
 0x275   :  { %757 = vmatpush.bf16.msrb.mxu0 %v1959_v27 }
 0x278   :  { %1708 = vmatmul.msk.bf16.vlgmr.msra.gmra.mxu1 %vm101_vm1, %v621_v41  ;;  %v2080_v41 = vmov 0  }
 0x279   :  { %563 = vst.msk [vmem:[#allocation3 + $0x38] sm:$0xf] %vm549_vm6, %v2080_v41 }
 0x27a   :  { %564 = vst.msk [vmem:[#allocation3 + $0x3c] sm:$0xf] %vm549_vm6, %v2080_v41 }
 0x27b   :  { %550 = vst.msk [vmem:[#allocation3 + $0x4] sm:$0xf] %vm549_vm6, %v2080_v41 }
 0x27c   :  { %551 = vst.msk [vmem:[#allocation3 + $0x8] sm:$0xf] %vm549_vm6, %v2080_v41 }
 0x27d   :  { %552 = vst.msk [vmem:[#allocation3 + $0xc] sm:$0xf] %vm549_vm6, %v2080_v41 }
 0x27e   :  { %553 = vst.msk [vmem:[#allocation3 + $0x10] sm:$0xf] %vm549_vm6, %v2080_v41 }
 0x27f   :  { %554 = vst.msk [vmem:[#allocation3 + $0x14] sm:$0xf] %vm549_vm6, %v2080_v41 }
 0x280   :  { %555 = vst.msk [vmem:[#allocation3 + $0x18] sm:$0xf] %vm549_vm6, %v2080_v41 }
 0x281   :  { %556 = vst.msk [vmem:[#allocation3 + $0x1c] sm:$0xf] %vm549_vm6, %v2080_v41 }
 0x282   :  { %557 = vst.msk [vmem:[#allocation3 + $0x20] sm:$0xf] %vm549_vm6, %v2080_v41 }
 0x283   :  { %558 = vst.msk [vmem:[#allocation3 + $0x24] sm:$0xf] %vm549_vm6, %v2080_v41 }
 0x284   :  { %559 = vst.msk [vmem:[#allocation3 + $0x28] sm:$0xf] %vm549_vm6, %v2080_v41 }
 0x285   :  { %560 = vst.msk [vmem:[#allocation3 + $0x2c] sm:$0xf] %vm549_vm6, %v2080_v41 }
 0x286   :  { %561 = vst.msk [vmem:[#allocation3 + $0x30] sm:$0xf] %vm549_vm6, %v2080_v41 }
 0x287   :  { %562 = vst.msk [vmem:[#allocation3 + $0x34] sm:$0xf] %vm549_vm6, %v2080_v41 }
 0x288   :  { %565 = vst.msk [vmem:[#allocation3 + $0x44] sm:$0xf] %vm549_vm6, %v2080_v41 }
 0x289   :  { %566 = vst.msk [vmem:[#allocation3 + $0x48] sm:$0xf] %vm549_vm6, %v2080_v41 }
 0x28a   :  { %567 = vst.msk [vmem:[#allocation3 + $0x4c] sm:$0xf] %vm549_vm6, %v2080_v41 }
 0x28b   :  { %568 = vst.msk [vmem:[#allocation3 + $0x50] sm:$0xf] %vm549_vm6, %v2080_v41 }
 0x28c   :  { %569 = vst.msk [vmem:[#allocation3 + $0x54] sm:$0xf] %vm549_vm6, %v2080_v41 }
 0x28d   :  { %570 = vst.msk [vmem:[#allocation3 + $0x58] sm:$0xf] %vm549_vm6, %v2080_v41 }
 0x28e   :  { %571 = vst.msk [vmem:[#allocation3 + $0x5c] sm:$0xf] %vm549_vm6, %v2080_v41 }
 0x28f   :  { %572 = vst.msk [vmem:[#allocation3 + $0x60] sm:$0xf] %vm549_vm6, %v2080_v41 }
 0x290   :  { %573 = vst.msk [vmem:[#allocation3 + $0x64] sm:$0xf] %vm549_vm6, %v2080_v41 }
 0x291   :  { %574 = vst.msk [vmem:[#allocation3 + $0x68] sm:$0xf] %vm549_vm6, %v2080_v41 }
 0x292   :  { %575 = vst.msk [vmem:[#allocation3 + $0x6c] sm:$0xf] %vm549_vm6, %v2080_v41 }
 0x293   :  { %576 = vst.msk [vmem:[#allocation3 + $0x70] sm:$0xf] %vm549_vm6, %v2080_v41 }
 0x294   :  { %577 = vst.msk [vmem:[#allocation3 + $0x74] sm:$0xf] %vm549_vm6, %v2080_v41 }
 0x295   :  { %578 = vst.msk [vmem:[#allocation3 + $0x78] sm:$0xf] %vm549_vm6, %v2080_v41 }
 0x296   :  { %579 = vst.msk [vmem:[#allocation3 + $0x7c] sm:$0xf] %vm549_vm6, %v2080_v41 }
 0x2e5   :  { %v376_v44 = vpop.f32.mrf.mxu1 }
 0x2ec   :  { %v405_v45 = vpop.f32.mrf.mxu2 }
 0x2ed   :  { %v406_v46 = vadd.f32 %v405_v45, %v376_v44  ;;  %v441_v47 = vpop.f32.mrf.mxu3  ;;  %v378_v49 = vpop.f32.mrf.mxu1 }
 0x2ef   :  { %v446_v50 = vadd.f32 %v441_v47, %v406_v46 }
 0x2f1   :  { %v2346_v51 = vadd.f32 %v1992_v48, %v446_v50 }
 0x2f3   :  { %v1697_v52 = vmul.f32 -1.442695, %v2346_v51 }
 0x2f4   :  { %v407_v53 = vpop.f32.mrf.mxu2 }
 0x2f5   :  { %2012 = vpow2.f32 %v1697_v52  ;;  %v408_v54 = vadd.f32 %v407_v53, %v378_v49  ;;  %v443_v55 = vpop.f32.mrf.mxu3  ;;  %v641_v56 = vpop.f32.mrf.mxu1  ;;  %v1948_v49 = vld [vmem:[#allocation3 + $0x38] sm:$0xff] }
 0x2f6   :  { %v642_v63 = vadd.f32 %v1993_v59, %v641_v56  ;;  %v1947_v56 = vld [vmem:[#allocation3 + $0x30] sm:$0xff] }
 0x2f7   :  { %v447_v57 = vadd.f32 %v443_v55, %v408_v54 }
 0x2f8   :  { %v2358_v3 = vadd.f32 %v646_v0, %v642_v63 }
 0x2f9   :  { %v2349_v58 = vadd.f32 %v1992_v48, %v447_v57 }
 0x2fb   :  { %v2013_v60 = vpop.eup %2012  ;;  %v1698_v61 = vmul.f32 -1.442695, %v2349_v58 }
 0x2fc   :  { %v461_v62 = vadd.f32 1.0, %v2013_v60 }
 0x2fd   :  { %2014 = vpow2.f32 %v1698_v61  ;;  %v643_v1 = vpop.f32.mrf.mxu1 }
 0x2fe   :  { %2016 = vrcp.f32 %v461_v62  ;;  %v644_v2 = vadd.f32 %v1993_v59, %v643_v1  ;;  %v474_v11 = vand.u32 2147483648, %v461_v62  ;;  %v472_v15 = vand.u32 2147483647, %v461_v62 }
 0x2ff   :  { %vm468_vm14 = vweird.f32 %v461_v62 }
 0x300   :  { %v2360_v4 = vadd.f32 %v646_v0, %v644_v2  ;;  %v475_v18 = vor.u32 1.1754944e-38, %v474_v11  ;;  %vm473_vm0 = vcmp.eq.f32.partialorder %v472_v15, 8.507059e+37  ;;  %v1946_v0 = vld [vmem:[#allocation3 + $0x28] sm:$0xff]  ;;  %v1944_v11 = vld [vmem:[#allocation3 + $0x18] sm:$0xff] }
 0x301   :  { %v2491_v15 = vsel %vm147_vm2, %v1944_v11, 0 }
 0x302   :  { %v653_v6 = vpack.c.bf16 %v2360_v4, %v2358_v3 }
 0x303   :  { %v2015_v5 = vpop.eup %2014 }
 0x304   :  { %v2017_v7 = vpop.eup %2016  ;;  %v462_v8 = vadd.f32 1.0, %v2015_v5  ;;  %1717 = vmatmul.msk.bf16.vlgmr.msra.gmra.mxu2 %vm147_vm2, %v653_v6  ;;  %v2476_v5 = vsel %vm147_vm2, %v1946_v0, 0  ;;  %v1945_v6 = vld [vmem:[#allocation3 + $0x20] sm:$0xff] }
 0x305   :  { %v464_v9 = vmul.f32 %v2017_v7, %v461_v62  ;;  %vm469_vm13 = vweird.f32 %v2017_v7  ;;  %v2458_v62 = vsel %vm147_vm2, %v1947_v56, 0 }
 0x306   :  { %2018 = vrcp.f32 %v462_v8  ;;  %vm470_vm15 = vmor %vm468_vm14, %vm469_vm13  ;;  %v489_v23 = vand.u32 2147483648, %v462_v8  ;;  %v487_v28 = vand.u32 2147483647, %v462_v8  ;;  %vm483_vm3 = vweird.f32 %v462_v8 }
 0x307   :  { %v465_v10 = vsub.f32 1.0, %v464_v9 }
 0x308   :  { %v490_v30 = vor.u32 1.1754944e-38, %v489_v23  ;;  %vm488_vm5 = vcmp.eq.f32.partialorder %v487_v28, 8.507059e+37  ;;  %v1951_v28 = vld [vmem:[#allocation3 + $0x50] sm:$0xff] }
 0x309   :  { %v466_v12 = vmul.f32 %v2017_v7, %v465_v10  ;;  %v1955_v10 = vld [vmem:[#allocation3 + $0x70] sm:$0xff] }
 0x30b   :  { %v467_v16 = vadd.f32 %v2017_v7, %v466_v12  ;;  %v2488_v12 = vsel %vm147_vm2, %v1955_v10, 0 }
 0x30c   :  { %v2019_v17 = vpop.eup %2018 }
 0x30d   :  { %v471_v19 = vsel %vm470_vm15, %v2017_v7, %v467_v16  ;;  %v479_v20 = vmul.f32 %v2019_v17, %v462_v8  ;;  %vm484_vm1 = vweird.f32 %v2019_v17  ;;  %v1956_v7 = vld [vmem:[#allocation3 + $0x78] sm:$0xff]  ;;  %v2483_v8 = vsel %vm147_vm2, %v1945_v6, 0  ;;  %v1954_v16 = vld [vmem:[#allocation3 + $0x68] sm:$0xff] }
 0x30e   :  { %v476_v21 = vsel %vm473_vm0, %v475_v18, %v471_v19  ;;  %vm485_vm4 = vmor %vm483_vm3, %vm484_vm1  ;;  %v1045_v9 = vsel %vm147_vm2, %v1956_v7, 0  ;;  %v1953_v18 = vld [vmem:[#allocation3 + $0x60] sm:$0xff]  ;;  %vm1082_vm1 = vcmask 64512  }
 0x30f   :  { %495 = vrot.lane.b32.xlu1 %v476_v21, %s2079_s29  ;;  %v480_v22 = vsub.f32 1.0, %v479_v20  ;;  %v2500_v19 = vsel %vm147_vm2, %v1953_v18, 0  ;;  %v1943_v20 = vld [vmem:[#allocation3 + $0x10] sm:$0xff]  ;;  %v1952_v21 = vld [vmem:[#allocation3 + $0x58] sm:$0xff] }
 0x310   :  { %v2507_v23 = vsel %vm147_vm2, %v1952_v21, 0 }
 0x311   :  { %v481_v24 = vmul.f32 %v2019_v17, %v480_v22  ;;  %v2504_v22 = vsel %vm147_vm2, %v1943_v20, 0 }
 0x313   :  { %v482_v29 = vadd.f32 %v2019_v17, %v481_v24  ;;  %v1942_v24 = vld [vmem:[#allocation3 + $0x8] sm:$0xff] }
 0x315   :  { %v486_v32 = vsel %vm485_vm4, %v2019_v17, %v482_v29  ;;  %v2496_v17 = vsel %vm147_vm2, %v1954_v16, 0  ;;  %v2512_v29 = vsel %vm147_vm2, %v1942_v24, 0 }
 0x316   :  { %v491_v33 = vsel %vm488_vm5, %v490_v30, %v486_v32  ;;  %v2515_v30 = vsel %vm147_vm2, %v1951_v28, 0  ;;  %v1966_v32 = vld [vmem:[%s2726_s20 + $0x8] sm:$0xff] }
 0x317   :  { %497 = vrot.lane.b32.xlu1 %v491_v33, %s2079_s29  ;;  %v1950_v33 = vld [vmem:[#allocation3 + $0x48] sm:$0xff]  ;;  %886 = vmatpush.bf16.msrb.mxu2 %v1966_v32 }
 0x318   :  { %v2523_v34 = vsel %vm147_vm2, %v1950_v33, 0 }
 0x31b   :  { %887 = vmatpush.bf16.msrb.mxu2 %v1965_v35 }
 0x381   :  { %v496_v40 = vpop.permute.xlu1 %495 }
 0x382   :  { %v501_v43 = vmul.f32 %v496_v40, %v2346_v51  ;;  %v2421_v51 = vsel %vm147_vm2, %v1948_v49, 0 }
 0x383   :  { %967 = vmatpush.bf16.xpose.msrb.mxu3 %v2421_v51 }
 0x384   :  { %v503_v47 = vadd.f32 %v501_v43, %v2318_v26 }
 0x386   :  { %v505_v26 = vmul.f32 0.70710677, %v503_v47 }
 0x387   :  { %v682_v44 = vpop.f32.mrf.mxu2 }
 0x388   :  { %v2407_v45 = vadd.f32 %v1994_v42, %v682_v44 }
 0x389   :  { %v498_v46 = vpop.permute.xlu1 %497 }
 0x38a   :  { %v502_v48 = vmul.f32 %v498_v46, %v2349_v58  ;;  %690 = vst.msk [vmem:[#allocation2 + $0x8] sm:$0xff] %vm147_vm2, %v2407_v45 }
 0x38b   :  { %968 = vmatpush.bf16.xpose.msrb.mxu3 %v2458_v62 }
 0x38c   :  { %v504_v50 = vadd.f32 %v502_v48, %v2323_v31 }
 0x38e   :  { %v506_v52 = vmul.f32 0.70710677, %v504_v50 }
 0x38f   :  { %v684_v53 = vpop.f32.mrf.mxu2 }
 0x390   :  { %v511_v31 = vpack.c.bf16 %v506_v52, %v505_v26  ;;  %v2432_v54 = vadd.f32 %v1994_v42, %v684_v53 }
 0x391   :  { %v699_v55 = vld [vmem:[#allocation2 + $0x7] sm:$0xff] }
 0x392   :  { %1707 = vmatmul.msk.bf16.vlgmr.msra.gmra.mxu0 %vm147_vm2, %v511_v31  ;;  %691 = vst.msk [vmem:[#allocation2 + $0x20] sm:$0xff] %vm147_vm2, %v2432_v54  ;;  %v764_v58 = vld [vmem:[#allocation2 + $0x8] sm:$0xff] }
 0x393   :  { %v692_v1 = vld [vmem:[#allocation2 + $0x6] sm:$0xff]  ;;  %969 = vmatpush.bf16.xpose.msrb.mxu3 %v2476_v5  ;;  %1047 = vmatpush.bf16.xpose.msra.mxu0 %v1045_v9 }
 0x399   :  { %v700_v57 = vld [vmem:[#allocation2 + $0x1f] sm:$0xff] }
 0x39a   :  { %v765_v59 = vld [vmem:[#allocation2 + $0x20] sm:$0xff]  ;;  %v705_v60 = vpack.c.bf16 %v700_v57, %v699_v55 }
 0x39b   :  { %v770_v61 = vpack.c.bf16 %v765_v59, %v764_v58  ;;  %v693_v63 = vld [vmem:[#allocation2 + $0x1e] sm:$0xff]  ;;  %970 = vmatpush.bf16.xpose.msrb.mxu3 %v2483_v8  ;;  %1048 = vmatpush.bf16.xpose.msra.mxu0 %v2488_v12 }
 0x39c   :  { %1726 = vmatmul.msk.bf16.vlgmr.msra.gmra.mxu3 %vm147_vm2, %v705_v60  ;;  %v698_v2 = vpack.c.bf16 %v693_v63, %v692_v1 }
 0x39d   :  { %1744 = vmatmul.msk.bf16.vlgmr.msrb.gmra.mxu1 %vm147_vm2, %v770_v61 }
 0x3a2   :  { %1735 = vmatmul.msk.bf16.vlgmr.msrb.gmra.mxu0 %vm147_vm2, %v698_v2 }
 0x3a3   :  { %971 = vmatpush.bf16.xpose.msrb.mxu3 %v2491_v15  ;;  %1049 = vmatpush.bf16.xpose.msra.mxu0 %v2496_v17 }
 0x3ab   :  { %1050 = vmatpush.bf16.xpose.msra.mxu0 %v2500_v19  ;;  %972 = vmatpush.bf16.xpose.msrb.mxu3 %v2504_v22 }
 0x3b3   :  { %1051 = vmatpush.bf16.xpose.msra.mxu0 %v2507_v23  ;;  %973 = vmatpush.bf16.xpose.msrb.mxu3 %v2512_v29 }
 0x3bb   :  { %1052 = vmatpush.bf16.xpose.msra.mxu0 %v2515_v30 }
 0x3c3   :  { %1053 = vmatpush.bf16.xpose.msra.mxu0 %v2523_v34 }
 0x40f   :  { %v540_v25 = vpop.f32.mrf.mxu0 }
 0x410   :  { %v541_v37 = vadd.f32 %v1995_v36, %v540_v25 }
 0x412   :  { %v545_v38 = vadd.f32 %v541_v37, %v2247_v13  ;;  %v580_v39 = vpack.c.bf16 %v541_v37, %v541_v37 }
 0x414   :  { %v547_v27 = vmul.f32 0.70710677, %v545_v38  ;;  %582 = vst.msk [vmem:[#allocation3] sm:$0xf] %vm549_vm6, %v580_v39 }
 0x416   :  { %v616_v40 = vpack.c.bf16 %v547_v27, %v547_v27 }
 0x417   :  { %v542_v41 = vpop.f32.mrf.mxu0 }
 0x418   :  { %v543_v42 = vadd.f32 %v1995_v36, %v542_v41  ;;  %v1088_v43 = vsel %vm1086_vm7, %v616_v40, 0 }
 0x419   :  { %1097 = vmatpush.bf16.msra.mxu1 %v1088_v43 }
 0x41a   :  { %v546_v44 = vadd.f32 %v543_v42, %v2249_v14  ;;  %v581_v46 = vpack.c.bf16 %v543_v42, %v543_v42  ;;  %v795_v26 = vpop.f32.mrf.mxu1  ;;  %v1996_v14 = vld [vmem:[%s2725_s19] ss:$0 sm:$0xff] }
 0x41b   :  { %v1941_v47 = vld [vmem:[#allocation3] sm:$0xff] }
 0x41c   :  { %v548_v48 = vmul.f32 0.70710677, %v546_v44  ;;  %583 = vst.msk [vmem:[#allocation3 + $0x40] sm:$0xf] %vm549_vm6, %v581_v46  ;;  %v2538_v13 = vsel %vm147_vm2, %v1941_v47, 0 }
 0x41d   :  { %974 = vmatpush.bf16.xpose.msrb.mxu3 %v2538_v13  ;;  %v1997_v46 = vld [vmem:[%s2727_s21] ss:$0 sm:$0xff] }
 0x41e   :  { %v617_v49 = vpack.c.bf16 %v548_v48, %v548_v48 }
 0x41f   :  { %v759_v50 = vpop.f32.mrf.mxu0  ;;  %v730_v52 = vpop.f32.mrf.mxu3 }
 0x420   :  { %v2542_v31 = vsel %vm1086_vm7, %v617_v49, 0  ;;  %v760_v53 = vadd.f32 %v759_v50, %v730_v52 }
 0x421   :  { %1116 = vmatpush.bf16.msra.mxu2 %v2542_v31 }
 0x422   :  { %v800_v55 = vadd.f32 %v795_v26, %v760_v53  ;;  %v797_v0 = vpop.f32.mrf.mxu1 }
 0x423   :  { %v1949_v56 = vld [vmem:[#allocation3 + $0x40] sm:$0xff] }
 0x424   :  { %v806_v57 = vadd.f32 %v1996_v14, %v800_v55  ;;  %v1024_v58 = vsel %vm147_vm2, %v1949_v56, 0  ;;  %v687_v56 = vlaneseq }
 0x425   :  { %1401 = vmatpush.bf16.xpose.msra.mxu3 %v1045_v9  ;;  %1054 = vmatpush.bf16.xpose.msra.mxu0 %v1024_v58 }
 0x426   :  { %v1745_v59 = vmul.f32 -1.442695, %v806_v57 }
 0x427   :  { %v761_v60 = vpop.f32.mrf.mxu0  ;;  %v732_v61 = vpop.f32.mrf.mxu3 }
 0x428   :  { %2020 = vpow2.f32 %v1745_v59  ;;  %v762_v63 = vadd.f32 %v761_v60, %v732_v61 }
 0x42a   :  { %v801_v1 = vadd.f32 %v797_v0, %v762_v63 }
 0x42c   :  { %v807_v2 = vadd.f32 %v1996_v14, %v801_v1 }
 0x42d   :  { %1402 = vmatpush.bf16.xpose.msra.mxu3 %v2488_v12  ;;  %1446 = vmatpush.bf16.msrb.mxu0 %v1088_v43 }
 0x42e   :  { %v2021_v6 = vpop.eup %2020  ;;  %v1746_v7 = vmul.f32 -1.442695, %v807_v2 }
 0x42f   :  { %v814_v9 = vadd.f32 1.0, %v2021_v6 }
 0x430   :  { %2022 = vpow2.f32 %v1746_v7 }
 0x431   :  { %2024 = vrcp.f32 %v814_v9  ;;  %v827_v20 = vand.u32 2147483648, %v814_v9  ;;  %v825_v24 = vand.u32 2147483647, %v814_v9  ;;  %vm821_vm9 = vweird.f32 %v814_v9 }
 0x433   :  { %v828_v32 = vor.u32 1.1754944e-38, %v827_v20  ;;  %vm826_vm11 = vcmp.eq.f32.partialorder %v825_v24, 8.507059e+37 }
 0x435   :  { %1403 = vmatpush.bf16.xpose.msra.mxu3 %v2496_v17 }
 0x436   :  { %v2023_v10 = vpop.eup %2022 }
 0x437   :  { %v2025_v11 = vpop.eup %2024  ;;  %v815_v16 = vadd.f32 1.0, %v2023_v10 }
 0x438   :  { %v817_v12 = vmul.f32 %v2025_v11, %v814_v9  ;;  %vm822_vm8 = vweird.f32 %v2025_v11 }
 0x439   :  { %2026 = vrcp.f32 %v815_v16  ;;  %vm823_vm10 = vmor %vm821_vm9, %vm822_vm8  ;;  %v842_v25 = vand.u32 2147483648, %v815_v16  ;;  %v840_v38 = vand.u32 2147483647, %v815_v16  ;;  %vm836_vm13 = vweird.f32 %v815_v16 }
 0x43a   :  { %v818_v18 = vsub.f32 1.0, %v817_v12  ;;  %v1968_v12 = vld [vmem:[%s2728_s22 + $0x8] sm:$0xff] }
 0x43b   :  { %vm841_vm15 = vcmp.eq.f32.partialorder %v840_v38, 8.507059e+37  ;;  %1152 = vmatpush.bf16.msrb.mxu1 %v1968_v12 }
 0x43c   :  { %v819_v21 = vmul.f32 %v2025_v11, %v818_v18  ;;  %v1967_v18 = vld [vmem:[%s2728_s22] sm:$0xff] }
 0x43d   :  { %1404 = vmatpush.bf16.xpose.msra.mxu3 %v2500_v19 }
 0x43e   :  { %v820_v28 = vadd.f32 %v2025_v11, %v819_v21 }
 0x43f   :  { %v2027_v17 = vpop.eup %2026  ;;  %1153 = vmatpush.bf16.msrb.mxu1 %v1967_v18 }
 0x440   :  { %v824_v33 = vsel %vm823_vm10, %v2025_v11, %v820_v28  ;;  %v832_v35 = vmul.f32 %v2027_v17, %v815_v16  ;;  %vm837_vm12 = vweird.f32 %v2027_v17 }
 0x441   :  { %v829_v19 = vsel %vm826_vm11, %v828_v32, %v824_v33  ;;  %vm838_vm14 = vmor %vm836_vm13, %vm837_vm12 }
 0x442   :  { %848 = vrot.lane.b32.xlu2 %v829_v19, %s2079_s29  ;;  %v833_v36 = vsub.f32 1.0, %v832_v35 }
 0x444   :  { %v834_v37 = vmul.f32 %v2027_v17, %v833_v36 }
 0x445   :  { %1405 = vmatpush.bf16.xpose.msra.mxu3 %v2507_v23  ;;  %v843_v23 = vor.u32 1.1754944e-38, %v842_v25 }
 0x446   :  { %v835_v39 = vadd.f32 %v2027_v17, %v834_v37 }
 0x448   :  { %v839_v27 = vsel %vm838_vm14, %v2027_v17, %v835_v39  ;;  %v1972_v39 = vld [vmem:[%s2724_s18 + $0x48] sm:$0xff] }
 0x449   :  { %v844_v40 = vsel %vm841_vm15, %v843_v23, %v839_v27  ;;  %v1970_v23 = vld [vmem:[%s2724_s18 + $0x38] sm:$0xff]  ;;  %v1971_v27 = vld [vmem:[%s2724_s18 + $0x40] sm:$0xff] }
 0x44a   :  { %850 = vrot.lane.b32.xlu2 %v844_v40, %s2079_s29  ;;  %v1969_v40 = vld [vmem:[%s2724_s18 + $0x30] sm:$0xff] }
 0x44d   :  { %1406 = vmatpush.bf16.xpose.msra.mxu3 %v2515_v30 }
 0x455   :  { %1407 = vmatpush.bf16.xpose.msra.mxu3 %v2523_v34 }
 0x45d   :  { %1408 = vmatpush.bf16.xpose.msra.mxu3 %v1024_v58 }
 0x49c   :  { %v849_v41 = vpop.permute.xlu2 %848 }
 0x49d   :  { %v2557_v43 = vmul.f32 %v849_v41, %v806_v57  ;;  %v2571_v57 = vand.u32 127, %v687_v56  ;;  %v1974_v41 = vld [vmem:[%s2724_s18 + $0x58] sm:$0xff] }
 0x49f   :  { %vm689_vm0 = vcmp.lt.s32.totalorder %v2571_v57, 8 }
 0x4a4   :  { %v851_v42 = vpop.permute.xlu2 %850 }
 0x4a5   :  { %v2559_v44 = vmul.f32 %v851_v42, %v807_v2  ;;  %v1976_v42 = vld [vmem:[%s2726_s20 + $0x18] sm:$0xff] }
 0x4a7   :  { %v860_v30 = vpack.c.bf16 %v2559_v44, %v2557_v43 }
 0x4a9   :  { %1755 = vmatmul.msk.bf16.vlgmr.msrb.gmra.mxu2 %vm147_vm2, %v860_v30  ;;  %v1973_v30 = vld [vmem:[%s2724_s18 + $0x50] sm:$0xff] }
 0x4aa   :  { %1206 = vmatpush.bf16.msrb.mxu2 %v1972_v39 }
 0x4ae   :  { %1207 = vmatpush.bf16.msrb.mxu2 %v1971_v27 }
 0x52c   :  { %v889_v47 = vpop.f32.mrf.mxu2 }
 0x52d   :  { %v890_v48 = vadd.f32 %v1997_v46, %v889_v47  ;;  %v1998_v47 = vld [vmem:[%s2729_s23] ss:$0 sm:$0xff] }
 0x52f   :  { %v894_v34 = vadd.f32 %v890_v48, %v2358_v3 }
 0x531   :  { %v896_v49 = vmul.f32 0.70710677, %v894_v34 }
 0x533   :  { %v898_v50 = vpack.c.bf16 %v896_v49, %v896_v49 }
 0x534   :  { %v891_v26 = vpop.f32.mrf.mxu2 }
 0x535   :  { %v892_v52 = vadd.f32 %v1997_v46, %v891_v26  ;;  %1788 = vmatmul.msk.bf16.vlgmr.msrb.gmra.mxu3 %vm147_vm2, %v898_v50  ;;  %v1975_v46 = vld [vmem:[%s2726_s20 + $0x10] sm:$0xff] }
 0x537   :  { %v895_v53 = vadd.f32 %v892_v52, %v2360_v4 }
 0x539   :  { %v897_v14 = vmul.f32 0.70710677, %v895_v53 }
 0x53b   :  { %v899_v55 = vpack.c.bf16 %v897_v14, %v897_v14 }
 0x53d   :  { %1821 = vmatmul.msk.bf16.vlgmr.msra.gmra.mxu0 %vm147_vm2, %v899_v55 }
 0x5b8   :  { %v976_v58 = vpop.f32.mrf.mxu3 }
 0x5b9   :  { %v1060_v59 = vsel %vm689_vm0, %v976_v58, -1e+30 }
 0x5ba   :  { %v1056_v60 = vpop.f32.mrf.mxu0  ;;  %1062 = vmax.xlane.f32.xlu1 %v1060_v59 }
 0x5bb   :  { %v1061_v61 = vsel %vm689_vm0, %v1056_v60, -1e+30 }
 0x5bc   :  { %1064 = vmax.xlane.f32.xlu0 %v1061_v61 }
 0x5c0   :  { %v978_v63 = vpop.f32.mrf.mxu3 }
 0x5c2   :  { %v1058_v0 = vpop.f32.mrf.mxu0 }
 0x62d   :  { %v1063_v6 = vpop.xlane.xlu1 %1062 }
 0x62e   :  { %v1066_v9 = vsub.f32 %v1060_v59, %v1063_v6  ;;  %v1999_v6 = vld [vmem:[%s2725_s19 + $0x1] ss:$0 sm:$0xff] }
 0x62f   :  { %v1065_v1 = vpop.xlane.xlu0 %1064 }
 0x630   :  { %v1067_v2 = vsub.f32 %v1061_v61, %v1065_v1  ;;  %v1068_v10 = vmul.f32 1.442695, %v1066_v9 }
 0x632   :  { %v1070_v7 = vmul.f32 1.442695, %v1067_v2 }
 0x634   :  { %2028 = vpow2.f32 %v1070_v7 }
 0x635   :  { %2030 = vpow2.f32 %v1068_v10 }
 0x63a   :  { %v2029_v11 = vpop.eup %2028 }
 0x63b   :  { %1074 = vadd.xlane.f32.xlu2 %v2029_v11  ;;  %v2031_v16 = vpop.eup %2030 }
 0x643   :  { %1072 = vadd.xlane.f32.xlu2 %v2031_v16 }
 0x6ae   :  { %v1075_v20 = vpop.xlane.xlu2 %1074 }
 0x6af   :  { %2032 = vrcp.f32 %v1075_v20 }
 0x6b5   :  { %v2033_v21 = vpop.eup %2032 }
 0x6b6   :  { %v1079_v24 = vmul.f32 %v2033_v21, %v2029_v11  ;;  %v1073_v28 = vpop.xlane.xlu2 %1072 }
 0x6b7   :  { %2034 = vrcp.f32 %v1073_v28 }
 0x6b8   :  { %v1081_v17 = vpack.c.bf16 %v1079_v24, %v1079_v24 }
 0x6ba   :  { %1823 = vmatmul.msk.bf16.vlgmr.msra.gmra.mxu2 %vm1082_vm1, %v1081_v17 }
 0x6bb   :  { %1271 = vmatpush.bf16.msra.mxu2 %v1974_v41 }
 0x6bd   :  { %v2035_v32 = vpop.eup %2034 }
 0x6be   :  { %v1078_v33 = vmul.f32 %v2035_v32, %v2031_v16 }
 0x6bf   :  { %1272 = vmatpush.bf16.msra.mxu2 %v1973_v30 }
 0x6c0   :  { %v1080_v35 = vpack.c.bf16 %v1078_v33, %v1078_v33 }
 0x6c2   :  { %1822 = vmatmul.msk.bf16.vlgmr.msra.gmra.mxu1 %vm1082_vm1, %v1080_v35 }
 0x6c3   :  { %1235 = vmatpush.bf16.msra.mxu1 %v1970_v23 }
 0x6c7   :  { %1236 = vmatpush.bf16.msra.mxu1 %v1969_v40 }
 0x73d   :  { %v1118_v19 = vpop.f32.mrf.mxu2 }
 0x73f   :  { %v1099_v36 = vpop.f32.mrf.mxu1 }
 0x740   :  { %v1126_v25 = vpack.c.bf16 %v1118_v19, %v1099_v36 }
 0x742   :  { %1832 = vmatmul.msk.bf16.vlgmr.msrb.gmra.mxu1 %vm147_vm2, %v1126_v25 }
 0x743   :  { %1368 = vmatpush.bf16.msrb.mxu1 %v1976_v42 }
 0x745   :  { %v1120_v37 = vpop.f32.mrf.mxu2 }
 0x747   :  { %v1101_v38 = vpop.f32.mrf.mxu1  ;;  %1369 = vmatpush.bf16.msrb.mxu1 %v1975_v46 }
 0x7bf   :  { %v1155_v48 = vpop.f32.mrf.mxu1 }
 0x7c0   :  { %v1156_v34 = vadd.f32 %v1998_v47, %v1155_v48 }
 0x7c2   :  { %v1160_v49 = vadd.f32 %v1156_v34, %v2557_v43 }
 0x7c4   :  { %v1162_v50 = vmul.f32 0.70710677, %v1160_v49 }
 0x7c6   :  { %v1164_v26 = vadd.f32 %v1162_v50, %v2407_v45 }
 0x7c7   :  { %v1157_v52 = vpop.f32.mrf.mxu1 }
 0x7c8   :  { %v2616_v53 = vmul.f32 0.70710677, %v1164_v26  ;;  %v1158_v14 = vadd.f32 %v1998_v47, %v1157_v52  ;;  %v2000_v26 = vld [vmem:[%s2727_s21 + $0x1] ss:$0 sm:$0xff] }
 0x7ca   :  { %1168 = vst.msk [vmem:[#allocation2 + $0x8] sm:$0xff] %vm147_vm2, %v2616_v53  ;;  %v1161_v55 = vadd.f32 %v1158_v14, %v2559_v44 }
 0x7cc   :  { %v1163_v56 = vmul.f32 0.70710677, %v1161_v55 }
 0x7ce   :  { %v1165_v58 = vadd.f32 %v1163_v56, %v2432_v54 }
 0x7d0   :  { %v2622_v59 = vmul.f32 0.70710677, %v1165_v58 }
 0x7d1   :  { %v1178_v43 = vld [vmem:[#allocation2 + $0x7] sm:$0xff] }
 0x7d2   :  { %1169 = vst.msk [vmem:[#allocation2 + $0x20] sm:$0xff] %vm147_vm2, %v2622_v59  ;;  %v1170_v45 = vld [vmem:[#allocation2 + $0x6] sm:$0xff] }
 0x7d3   :  { %v1243_v44 = vld [vmem:[#allocation2 + $0x8] sm:$0xff] }
 0x7d9   :  { %v1179_v60 = vld [vmem:[#allocation2 + $0x1f] sm:$0xff] }
 0x7da   :  { %v1171_v61 = vld [vmem:[#allocation2 + $0x1e] sm:$0xff]  ;;  %v1184_v63 = vpack.c.bf16 %v1179_v60, %v1178_v43 }
 0x7db   :  { %v1177_v0 = vpack.c.bf16 %v1171_v61, %v1170_v45  ;;  %v1244_v54 = vld [vmem:[#allocation2 + $0x20] sm:$0xff] }
 0x7dc   :  { %1849 = vmatmul.msk.bf16.vlgmr.msrb.gmra.mxu2 %vm147_vm2, %v1184_v63  ;;  %v1249_v1 = vpack.c.bf16 %v1244_v54, %v1243_v44 }
 0x7dd   :  { %1858 = vmatmul.msk.bf16.vlgmr.msra.gmra.mxu1 %vm147_vm2, %v1177_v0  ;;  %1385 = vmatpush.bf16.xpose.msrb.mxu2 %v2421_v51 }
 0x7de   :  { %1462 = vmatpush.bf16.msra.mxu1 %v2542_v31 }
 0x7e5   :  { %1386 = vmatpush.bf16.xpose.msrb.mxu2 %v2458_v62 }
 0x7ec   :  { %1871 = vmatmul.msk.bf16.vlgmr.msra.gmra.mxu2 %vm147_vm2, %v1249_v1 }
 0x7ed   :  { %1387 = vmatpush.bf16.xpose.msrb.mxu2 %v2476_v5 }
 0x7f5   :  { %1388 = vmatpush.bf16.xpose.msrb.mxu2 %v2483_v8 }
 0x7fd   :  { %1389 = vmatpush.bf16.xpose.msrb.mxu2 %v2491_v15 }
 0x805   :  { %1390 = vmatpush.bf16.xpose.msrb.mxu2 %v2504_v22 }
 0x80d   :  { %1391 = vmatpush.bf16.xpose.msrb.mxu2 %v2512_v29 }
 0x815   :  { %1392 = vmatpush.bf16.xpose.msrb.mxu2 %v2538_v13 }
 0x85a   :  { %v1238_v62 = vpop.f32.mrf.mxu1 }
 0x85f   :  { %v1209_v51 = vpop.f32.mrf.mxu2 }
 0x860   :  { %v1239_v2 = vadd.f32 %v1238_v62, %v1209_v51 }
 0x862   :  { %v1240_v10 = vpop.f32.mrf.mxu1 }
 0x867   :  { %v1211_v31 = vpop.f32.mrf.mxu2 }
 0x868   :  { %v1241_v15 = vadd.f32 %v1240_v10, %v1211_v31 }
 0x86f   :  { %v1274_v7 = vpop.f32.mrf.mxu2 }
 0x870   :  { %v1279_v5 = vadd.f32 %v1274_v7, %v1239_v2 }
 0x872   :  { %v1286_v9 = vadd.f32 %v1999_v6, %v1279_v5 }
 0x874   :  { %v1873_v8 = vmul.f32 -1.442695, %v1286_v9 }
 0x876   :  { %2036 = vpow2.f32 %v1873_v8  ;;  %v1978_v8 = vld [vmem:[%s2728_s22 + $0x18] sm:$0xff] }
 0x877   :  { %v1276_v22 = vpop.f32.mrf.mxu2  ;;  %1500 = vmatpush.bf16.msra.mxu0 %v1978_v8 }
 0x878   :  { %v1280_v11 = vadd.f32 %v1276_v22, %v1241_v15 }
 0x87a   :  { %v1287_v29 = vadd.f32 %v1999_v6, %v1280_v11 }
 0x87c   :  { %v2037_v16 = vpop.eup %2036  ;;  %v1874_v13 = vmul.f32 -1.442695, %v1287_v29 }
 0x87d   :  { %v1294_v12 = vadd.f32 1.0, %v2037_v16 }
 0x87e   :  { %2038 = vpow2.f32 %v1874_v13 }
 0x87f   :  { %2040 = vrcp.f32 %v1294_v12  ;;  %v1307_v17 = vand.u32 2147483648, %v1294_v12  ;;  %v1305_v33 = vand.u32 2147483647, %v1294_v12  ;;  %vm1301_vm4 = vweird.f32 %v1294_v12 }
 0x881   :  { %v1308_v36 = vor.u32 1.1754944e-38, %v1307_v17  ;;  %vm1306_vm6 = vcmp.eq.f32.partialorder %v1305_v33, 8.507059e+37  ;;  %v1980_v17 = vld [vmem:[%s2722_s16 + $0x8] sm:$0xff] }
 0x882   :  { %v1982_v33 = vld [vmem:[%s2730_s24 + $0x8] sm:$0xff] }
 0x884   :  { %v2039_v18 = vpop.eup %2038 }
 0x885   :  { %v2041_v20 = vpop.eup %2040  ;;  %v1295_v21 = vadd.f32 1.0, %v2039_v18 }
 0x886   :  { %v1297_v24 = vmul.f32 %v2041_v20, %v1294_v12  ;;  %vm1302_vm3 = vweird.f32 %v2041_v20  ;;  %v1977_v12 = vld [vmem:[%s2728_s22 + $0x10] sm:$0xff] }
 0x887   :  { %2042 = vrcp.f32 %v1295_v21  ;;  %vm1303_vm5 = vmor %vm1301_vm4, %vm1302_vm3  ;;  %v1322_v23 = vand.u32 2147483648, %v1295_v21  ;;  %v1320_v40 = vand.u32 2147483647, %v1295_v21  ;;  %vm1316_vm8 = vweird.f32 %v1295_v21  ;;  %1501 = vmatpush.bf16.msra.mxu0 %v1977_v12 }
 0x888   :  { %v1298_v28 = vsub.f32 1.0, %v1297_v24 }
 0x889   :  { %v1323_v42 = vor.u32 1.1754944e-38, %v1322_v23  ;;  %vm1321_vm10 = vcmp.eq.f32.partialorder %v1320_v40, 8.507059e+37 }
 0x88a   :  { %v1299_v32 = vmul.f32 %v2041_v20, %v1298_v28 }
 0x88c   :  { %v1300_v35 = vadd.f32 %v2041_v20, %v1299_v32  ;;  %v1979_v32 = vld [vmem:[%s2722_s16] sm:$0xff] }
 0x88d   :  { %v2043_v19 = vpop.eup %2042 }
 0x88e   :  { %v1304_v25 = vsel %vm1303_vm5, %v2041_v20, %v1300_v35  ;;  %v1312_v37 = vmul.f32 %v2043_v19, %v1295_v21  ;;  %vm1317_vm7 = vweird.f32 %v2043_v19  ;;  %v2001_v35 = vld [vmem:[%s2729_s23 + $0x1] ss:$0 sm:$0xff] }
 0x88f   :  { %v1309_v38 = vsel %vm1306_vm6, %v1308_v36, %v1304_v25  ;;  %vm1318_vm9 = vmor %vm1316_vm8, %vm1317_vm7 }
 0x890   :  { %1328 = vrot.lane.b32.xlu0 %v1309_v38, %s2079_s29  ;;  %v1313_v39 = vsub.f32 1.0, %v1312_v37 }
 0x892   :  { %v1314_v27 = vmul.f32 %v2043_v19, %v1313_v39 }
 0x894   :  { %v1315_v41 = vadd.f32 %v2043_v19, %v1314_v27 }
 0x896   :  { %v1319_v30 = vsel %vm1318_vm9, %v2043_v19, %v1315_v41 }
 0x897   :  { %v1324_v46 = vsel %vm1321_vm10, %v1323_v42, %v1319_v30 }
 0x898   :  { %1330 = vrot.lane.b32.xlu1 %v1324_v46, %s2079_s29 }
 0x902   :  { %v1329_v47 = vpop.permute.xlu0 %1328 }
 0x903   :  { %v2643_v34 = vmul.f32 %v1329_v47, %v1286_v9  ;;  %v1981_v47 = vld [vmem:[%s2730_s24] sm:$0xff]  ;;  %s2082_s24 = smov 128  }
 0x90a   :  { %v1331_v48 = vpop.permute.xlu1 %1330 }
 0x90b   :  { %v2645_v49 = vmul.f32 %v1331_v48, %v1287_v29 }
 0x90d   :  { %v1341_v50 = vpack.c.bf16 %v2645_v49, %v2643_v34 }
 0x90f   :  { %1888 = vmatmul.msk.bf16.vlgmr.msrb.gmra.mxu1 %vm147_vm2, %v1341_v50 }
 0x910   :  { %1546 = vmatpush.bf16.msrb.mxu1 %v1980_v17 }
 0x914   :  { %1547 = vmatpush.bf16.msrb.mxu1 %v1979_v32 }
 0x98c   :  { %v1371_v52 = vpop.f32.mrf.mxu1 }
 0x98d   :  { %v1372_v14 = vadd.f32 %v2000_v26, %v1371_v52 }
 0x98f   :  { %v1376_v55 = vadd.f32 %v1372_v14, %v2358_v3 }
 0x991   :  { %v1378_v56 = vmul.f32 0.70710677, %v1376_v55 }
 0x993   :  { %v1380_v58 = vpack.c.bf16 %v1378_v56, %v1378_v56 }
 0x994   :  { %v1373_v43 = vpop.f32.mrf.mxu1 }
 0x995   :  { %v1374_v60 = vadd.f32 %v2000_v26, %v1373_v43  ;;  %1889 = vmatmul.msk.bf16.vlgmr.msrb.gmra.mxu2 %vm147_vm2, %v1380_v58 }
 0x997   :  { %v1377_v45 = vadd.f32 %v1374_v60, %v2360_v4 }
 0x999   :  { %v1379_v61 = vmul.f32 0.70710677, %v1377_v45 }
 0x99b   :  { %v1381_v63 = vpack.c.bf16 %v1379_v61, %v1379_v61 }
 0x99d   :  { %1890 = vmatmul.msk.bf16.vlgmr.msra.gmra.mxu3 %vm147_vm2, %v1381_v63 }
 0xa18   :  { %v1394_v0 = vpop.f32.mrf.mxu2 }
 0xa19   :  { %v1414_v54 = vsel %vm689_vm0, %v1394_v0, -1e+30 }
 0xa1a   :  { %1416 = vmax.xlane.f32.xlu2 %v1414_v54 }
 0xa20   :  { %v1396_v44 = vpop.f32.mrf.mxu2  ;;  %v1410_v1 = vpop.f32.mrf.mxu3 }
 0xa21   :  { %v1415_v3 = vsel %vm689_vm0, %v1410_v1, -1e+30 }
 0xa22   :  { %1418 = vmax.xlane.f32.xlu2 %v1415_v3 }
 0xa28   :  { %v1412_v51 = vpop.f32.mrf.mxu3 }
 0xa8d   :  { %v1417_v31 = vpop.xlane.xlu2 %1416 }
 0xa8e   :  { %v1420_v62 = vsub.f32 %v1414_v54, %v1417_v31 }
 0xa90   :  { %v1422_v2 = vmul.f32 1.442695, %v1420_v62 }
 0xa92   :  { %2044 = vpow2.f32 %v1422_v2 }
 0xa95   :  { %v1419_v4 = vpop.xlane.xlu2 %1418 }
 0xa96   :  { %v1421_v6 = vsub.f32 %v1415_v3, %v1419_v4 }
 0xa98   :  { %v2045_v7 = vpop.eup %2044  ;;  %v1424_v5 = vmul.f32 1.442695, %v1421_v6 }
 0xa99   :  { %1426 = vadd.xlane.f32.xlu0 %v2045_v7 }
 0xa9a   :  { %2046 = vpow2.f32 %v1424_v5 }
 0xaa0   :  { %v2047_v9 = vpop.eup %2046 }
 0xaa1   :  { %1428 = vadd.xlane.f32.xlu2 %v2047_v9 }
 0xb0c   :  { %v1427_v57 = vpop.xlane.xlu0 %1426 }
 0xb0d   :  { %2048 = vrcp.f32 %v1427_v57 }
 0xb13   :  { %v2049_v10 = vpop.eup %2048 }
 0xb14   :  { %v1432_v15 = vmul.f32 %v2049_v10, %v2045_v7  ;;  %v1429_v22 = vpop.xlane.xlu2 %1428 }
 0xb15   :  { %2050 = vrcp.f32 %v1429_v22 }
 0xb16   :  { %v1434_v11 = vpack.c.bf16 %v1432_v15, %v1432_v15  ;;  %1594 = vst [vmem:[#allocation4] sm:$0xff] %v1432_v15 }
 0xb18   :  { %1891 = vmatmul.msk.bf16.vlgmr.msrb.gmra.mxu0 %vm1082_vm1, %v1434_v11 }
 0xb19   :  { %1584 = vmatpush.bf16.msrb.mxu0 %v1982_v33 }
 0xb1b   :  { %v2051_v29 = vpop.eup %2050 }
 0xb1c   :  { %v1433_v16 = vmul.f32 %v2051_v29, %v2047_v9 }
 0xb1d   :  { %1585 = vmatpush.bf16.msrb.mxu0 %v1981_v47 }
 0xb1e   :  { %v1435_v13 = vpack.c.bf16 %v1433_v16, %v1433_v16  ;;  %1595 = vst [vmem:[#allocation4 + $0x8] sm:$0xff] %v1433_v16 }
 0xb1f   :  { %1610 = dma.vmem_to_hbm [thread:$0]  %s1603_s0, 256, %s1605_s6, [#allocation5], %s2082_s24, %s2082_s24, %s2083_s10  }
 0xb20   :  { %1892 = vmatmul.msk.bf16.vlgmr.msra.gmra.mxu1 %vm1082_vm1, %v1435_v13 }
 0xb95   :  { %v1448_v18 = vpop.f32.mrf.mxu0 }
 0xb9d   :  { %v1450_v20 = vpop.f32.mrf.mxu0  ;;  %v1464_v21 = vpop.f32.mrf.mxu1 }
 0xb9e   :  { %v1473_v24 = vpack.c.bf16 %v1464_v21, %v1448_v18 }
 0xba0   :  { %1906 = vmatmul.msk.bf16.vlgmr.msra.gmra.mxu0 %vm147_vm2, %v1473_v24 }
 0xba5   :  { %v1466_v28 = vpop.f32.mrf.mxu1 }
 0xc1d   :  { %v1503_v19 = vpop.f32.mrf.mxu0 }
 0xc1e   :  { %v1504_v36 = vadd.f32 %v2001_v35, %v1503_v19 }
 0xc20   :  { %v1508_v25 = vadd.f32 %v1504_v36, %v2643_v34  ;;  %v2002_v34 = vld [vmem:[%s2723_s17] ss:$0 sm:$0xff] }
 0xc22   :  { %v1510_v38 = vmul.f32 0.70710677, %v1508_v25 }
 0xc24   :  { %v1512_v27 = vadd.f32 %v1510_v38, %v2616_v53 }
 0xc25   :  { %v1505_v37 = vpop.f32.mrf.mxu0 }
 0xc26   :  { %v1506_v39 = vadd.f32 %v2001_v35, %v1505_v37  ;;  %v1514_v42 = vmul.f32 0.70710677, %v1512_v27 }
 0xc28   :  { %v1509_v23 = vadd.f32 %v1506_v39, %v2645_v49 }
 0xc2a   :  { %v1511_v40 = vmul.f32 0.70710677, %v1509_v23 }
 0xc2c   :  { %v1513_v41 = vadd.f32 %v1511_v40, %v2622_v59  ;;  %v2003_v59 = vld [vmem:[%s2731_s25] ss:$0 sm:$0xff] }
 0xc2e   :  { %v1515_v30 = vmul.f32 0.70710677, %v1513_v41 }
 0xc30   :  { %v1520_v46 = vpack.c.bf16 %v1515_v30, %v1514_v42 }
 0xc32   :  { %1915 = vmatmul.msk.bf16.vlgmr.msrb.gmra.mxu1 %vm147_vm2, %v1520_v46 }
 0xcaf   :  { %v1549_v48 = vpop.f32.mrf.mxu1 }
 0xcb0   :  { %v1550_v53 = vadd.f32 %v2002_v34, %v1549_v48 }
 0xcb7   :  { %v1551_v49 = vpop.f32.mrf.mxu1 }
 0xcb8   :  { %v1552_v50 = vadd.f32 %v2002_v34, %v1551_v49 }
 0xcba   :  { %v1558_v26 = vpack.c.bf16 %v1552_v50, %v1550_v53 }
 0xcbc   :  { %1924 = vmatmul.msk.bf16.vlgmr.msrb.gmra.mxu0 %vm147_vm2, %v1558_v26 }
 0xd39   :  { %v1587_v52 = vpop.f32.mrf.mxu0 }
 0xd3a   :  { %v1588_v14 = vadd.f32 %v2003_v59, %v1587_v52 }
 0xd3c   :  { %1592 = vst [vmem:[%s2732_s26] sm:$0xff] %v1588_v14 }
 0xd41   :  { %v1589_v55 = vpop.f32.mrf.mxu0 }
 0xd42   :  { %v1590_v56 = vadd.f32 %v2003_v59, %v1589_v55 }
 0xd44   :  { %1593 = vst [vmem:[%s2732_s26 + $0x8] sm:$0xff] %v1590_v56 }
 0xd45   :  { %2076 = dma.done.wait [#allocation5], 256  }
 0xd46   :  { %2077 = vsyncadd [#allocation5], 4294967040 }
 0xd47   :  { %1617 = vsyncpa [#allocation5], 1 }

</bundles_post_ra>
